<compile_context>
chip_gen: v7x
topology: tpu7x:2x2x1
jax: 0.10.0
libtpu: 0.0.40
codegen_flags: <defaults>
</compile_context>

<pallas_src>
import jax
import jax.numpy as jnp
from jax.experimental import pallas as pl
from jax.experimental.pallas import tpu as pltpu


def _round_up(x, m):
    return ((x + m - 1) // m) * m


def _cdiv(a, b):
    return (a + b - 1) // b


# ----------------------------------------------------------------------------
# Kernel 1: LSTM recurrence. Gate pre-activations from x are precomputed
# (hoisted); per step only one fused (Bg, 128) @ (128, 512) dot + elementwise.
# Grid: (batch_groups, time_chunks); (h, c) carried in VMEM scratch.
# ----------------------------------------------------------------------------
def _lstm_kernel(gx_ref, whh_ref, out_ref, h_scr, c_scr):
    GP = h_scr.shape[-1]                 # 128 (lane-padded hidden per gate)
    Tb = gx_ref.shape[0]

    @pl.when(pl.program_id(1) == 0)      # fresh (h, c) per batch group
    def _init():
        h_scr[...] = jnp.zeros_like(h_scr)
        c_scr[...] = jnp.zeros_like(c_scr)

    def step(t, carry):
        # One fused dot; every gate occupies a full 128-lane slot so the four
        # slices below are free vreg splits (no XLU lane rotates per step).
        g = gx_ref[t] + jnp.dot(h_scr[...], whh_ref[...],
                                preferred_element_type=jnp.float32)  # (Bg, 4*GP)
        i_g = jax.nn.sigmoid(g[:, 0 * GP:1 * GP])
        f_g = jax.nn.sigmoid(g[:, 1 * GP:2 * GP])
        g_g = jnp.tanh(g[:, 2 * GP:3 * GP])
        o_g = jax.nn.sigmoid(g[:, 3 * GP:4 * GP])
        c_new = f_g * c_scr[...] + i_g * g_g
        h_new = o_g * jnp.tanh(c_new)
        c_scr[...] = c_new
        h_scr[...] = h_new
        out_ref[t] = h_new               # lane-dense (Bg, 128) store
        return carry

    jax.lax.fori_loop(0, Tb, step, 0)


def lstm_forward(gx, whh_p, *, tb, batch_groups=1):
    """gx: (S_pad, Bp, 4*GP) precomputed x-gates (time-major, lane-padded gates).
    Returns h: (S_pad, Bp, GP)."""
    S_pad, Bp, G4 = gx.shape
    GP = whh_p.shape[0]
    nck = S_pad // tb
    nbg = batch_groups
    Bg = Bp // nbg
    grid_spec = pltpu.PrefetchScalarGridSpec(
        num_scalar_prefetch=0,
        grid=(nbg, nck),                                      # time innermost
        in_specs=[
            pl.BlockSpec((tb, Bg, G4), lambda b, c: (c, b, 0)),
            pl.BlockSpec((GP, G4), lambda b, c: (0, 0)),      # resident weights
        ],
        out_specs=pl.BlockSpec((tb, Bg, GP), lambda b, c: (c, b, 0)),
        scratch_shapes=[pltpu.VMEM((Bg, GP), jnp.float32),    # h state
                        pltpu.VMEM((Bg, GP), jnp.float32)],   # c state
    )
    return pl.pallas_call(
        _lstm_kernel,
        grid_spec=grid_spec,
        out_shape=jax.ShapeDtypeStruct((S_pad, Bp, GP), jnp.float32),
        compiler_params=pltpu.CompilerParams(
            dimension_semantics=("parallel", "arbitrary")),
    )(gx, whh_p)


# ----------------------------------------------------------------------------
# Kernel 2: conv head + fused Linear. h stays resident in VMEM; the grid tiles
# conv1d output positions; the (Bp, 128) output block is a resident accumulator
# across tiles (so spk1/spk2 never touch HBM).
# ----------------------------------------------------------------------------
def head_forward(h_tm, w1s, w2e, w2o, w3p, *, tq, qh_pad, nout_pad):
    S_pad, Bp, GP = h_tm.shape
    KH = w1s.shape[0]
    CH = w1s.shape[2]
    J = qh_pad // tq

    def head_kernel(h_ref, w1_ref, w2e_ref, w2o_ref, w3_ref, out_ref):
        j = pl.program_id(0)

        @pl.when(j == 0)
        def _init():
            out_ref[...] = jnp.zeros_like(out_ref)

        base = 2 * tq * j                      # first conv2d position of tile
        # Conv2d(1, CH, (KH, H)) as KH shifted lane-dense (K=GP) matmuls.
        acc = jnp.zeros((2 * tq * Bp, CH), jnp.float32)
        for k in range(KH):
            hk = h_ref[pl.ds(base + k, 2 * tq)]               # (2*tq, Bp, GP)
            acc = acc + jnp.dot(hk.reshape(2 * tq * Bp, GP), w1_ref[k],
                                preferred_element_type=jnp.float32)
        spk1 = (acc > 1.0).astype(jnp.float32)                # Leaky spike #1
        # Conv1d(CH, CH, k=2, s=2): even/odd split via sublane-aligned slices
        # (Bp is a multiple of 8).
        s3 = spk1.reshape(tq, 2 * Bp, CH)
        ev = s3[:, :Bp, :].reshape(tq * Bp, CH)
        od = s3[:, Bp:, :].reshape(tq * Bp, CH)
        pre2 = (jnp.dot(ev, w2e_ref[...], preferred_element_type=jnp.float32)
                + jnp.dot(od, w2o_ref[...], preferred_element_type=jnp.float32))
        spk2 = (pre2 > 1.0).astype(jnp.float32)               # Leaky spike #2
        # Fused Linear: batched-over-position matmul against the matching W3
        # slice, reduced over positions into the resident output accumulator.
        spk2_3d = spk2.reshape(tq, Bp, CH)
        part = jnp.einsum('qbc,qcn->qbn', spk2_3d, w3_ref[...],
                          preferred_element_type=jnp.float32)  # (tq, Bp, NOUTp)
        out_ref[...] += jnp.sum(part, axis=0)

    grid_spec = pltpu.PrefetchScalarGridSpec(
        num_scalar_prefetch=0,
        grid=(J,),
        in_specs=[
            # TODO(synk): for very large batch, window this block over j
            #             (2*tq+KH-1 rows) so it fits v7x's smaller VMEM; at
            #             these shapes it is only a few MB.
            pl.BlockSpec((S_pad, Bp, GP), lambda j: (0, 0, 0)),   # resident h
            pl.BlockSpec((KH, GP, CH), lambda j: (0, 0, 0)),
            pl.BlockSpec((CH, CH), lambda j: (0, 0)),
            pl.BlockSpec((CH, CH), lambda j: (0, 0)),
            pl.BlockSpec((tq, CH, nout_pad), lambda j: (j, 0, 0)),
        ],
        out_specs=pl.BlockSpec((Bp, nout_pad), lambda j: (0, 0)),  # accumulator
    )
    return pl.pallas_call(
        head_kernel,
        grid_spec=grid_spec,
        out_shape=jax.ShapeDtypeStruct((Bp, nout_pad), jnp.float32),
        compiler_params=pltpu.CompilerParams(
            dimension_semantics=("arbitrary",)),
    )(h_tm, w1s, w2e, w2o, w3p)


# ----------------------------------------------------------------------------
# Full forward pass.
# ----------------------------------------------------------------------------
def abstract_hybrid_forward(x, W_ih, W_hh, b_ih, b_hh, w1, w2, W3,
                            *, tb=128, tq=64, batch_groups=1):
    B, S, IN = x.shape
    H = W_hh.shape[1]
    CH, _, KH, KW = w1.shape          # (16, 1, 5, 25), KW == H
    assert KW == H
    P = S - KH + 1                    # conv2d output length
    Q = (P - 2) // 2 + 1              # conv1d (k=2, s=2) output length
    NOUT = W3.shape[0]
    GP = 128                          # lane-padded width per gate / hidden
    NOUT_pad = _round_up(NOUT, 128)

    # ---- padding / tiling choices ----
    Bp = _round_up(max(B, 8), 8 * batch_groups)     # sublane-aligned batch
    J = _cdiv(Q, max(1, min(tq, Q)))                # head position tiles
    Tq = _cdiv(Q, J)
    Qh_pad = Tq * J
    S_need = max(S, 2 * Qh_pad + KH - 1)            # head never reads OOB
    nck = _cdiv(S_need, tb)
    Tb = _cdiv(S_need, nck)                         # LSTM time chunk
    S_pad = Tb * nck

    # ---- weight packing (once, XLA-side); PyTorch gate order i|f|g|o ----
    def pad_gates(w):                               # (rows, 4H) -> (rows, 4*GP)
        return jnp.concatenate(
            [jnp.pad(w[:, g * H:(g + 1) * H], ((0, 0), (0, GP - H)))
             for g in range(4)], axis=1)

    wih_p = pad_gates(W_ih.T)                                   # (IN, 4*GP)
    whh_p = jnp.pad(pad_gates(W_hh.T), ((0, GP - H), (0, 0)))   # (GP, 4*GP)
    bias_p = pad_gates((b_ih + b_hh)[None, :])[0]               # (4*GP,)
    w1s = jnp.pad(jnp.transpose(w1[:, 0], (1, 2, 0)),
                  ((0, 0), (0, GP - H), (0, 0)))                # (KH, GP, CH)
    w2e = w2[:, :, 0].T                                         # (CH_in, CH_out)
    w2o = w2[:, :, 1].T
    # PyTorch Flatten of (B, CH, Q) orders features c*Q + q.
    w3p = W3.reshape(NOUT, CH, Q).transpose(2, 1, 0)            # (Q, CH, NOUT)
    w3p = jnp.pad(w3p, ((0, Qh_pad - Q), (0, 0), (0, NOUT_pad - NOUT)))

    # ---- hoisted x-projection: one MXU-shaped matmul, time-major output ----
    gx = jnp.einsum('bsi,ig->sbg', x, wih_p) + bias_p           # (S, B, 4*GP)
    gx = jnp.pad(gx, ((0, S_pad - S), (0, Bp - B), (0, 0)))
    # NOTE: padded time steps recur without bias -> bounded garbage h rows that
    # only feed zero-weighted (q >= Q) head positions.

    # ---- LSTM recurrence (Pallas) ----
    h_tm = lstm_forward(gx, whh_p, tb=Tb, batch_groups=batch_groups)

    # ---- conv head + fused Linear (Pallas) ----
    out = head_forward(h_tm, w1s, w2e, w2o, w3p,
                       tq=Tq, qh_pad=Qh_pad, nout_pad=NOUT_pad)
    return out[:B, :NOUT]


# ----------------------------------------------------------------------------
# Pure-JAX reference mirroring the PyTorch module semantics.
# ----------------------------------------------------------------------------
def reference_forward(x, W_ih, W_hh, b_ih, b_hh, w1, w2, W3):
    B, S, IN = x.shape
    H = W_hh.shape[1]
    CH, _, KH, _ = w1.shape
    h = jnp.zeros((B, H), jnp.float32)
    c = jnp.zeros((B, H), jnp.float32)
    outs = []
    for t in range(S):
        gi = x[:, t, :] @ W_ih.T + b_ih + h @ W_hh.T + b_hh
        i_g = jax.nn.sigmoid(gi[:, 0:H])
        f_g = jax.nn.sigmoid(gi[:, H:2 * H])
        g_g = jnp.tanh(gi[:, 2 * H:3 * H])
        o_g = jax.nn.sigmoid(gi[:, 3 * H:4 * H])
        c = f_g * c + i_g * g_g
        h = o_g * jnp.tanh(c)
        outs.append(h)
    out = jnp.stack(outs, axis=1)                               # (B, S, H)

    P = S - KH + 1
    conv1 = jnp.zeros((B, CH, P), jnp.float32)
    for k in range(KH):
        conv1 = conv1 + jnp.einsum('bpj,cj->bcp', out[:, k:k + P, :],
                                   w1[:, 0, k, :])
    spk1 = (conv1 > 1.0).astype(jnp.float32)

    Q = (P - 2) // 2 + 1
    conv2 = (jnp.einsum('bcq,dc->bdq', spk1[:, :, 0:2 * Q:2], w2[:, :, 0])
             + jnp.einsum('bcq,dc->bdq', spk1[:, :, 1:2 * Q:2], w2[:, :, 1]))
    spk2 = (conv2 > 1.0).astype(jnp.float32)
    flat = spk2.reshape(B, CH * Q)
    return flat @ W3.T


if __name__ == "__main__":
    # full-precision f32 matmuls so kernel and reference agree at spike thresholds
    jax.config.update("jax_default_matmul_precision", "highest")

    B, S, IN, H = 10, 12, 200, 25      # small seq; real module uses S=668
    CH, KH = 16, 5
    P = S - KH + 1                     # 8
    Q = (P - 2) // 2 + 1               # 4
    FEAT = CH * Q                      # 64 (stands in for 5312)
    NOUT = 91

    key = jax.random.PRNGKey(0)
    ks = jax.random.split(key, 8)
    x = jax.random.normal(ks[0], (B, S, IN), jnp.float32)
    W_ih = jax.random.normal(ks[1], (4 * H, IN), jnp.float32) * 0.1
    W_hh = jax.random.normal(ks[2], (4 * H, H), jnp.float32) * 0.1
    b_ih = jax.random.normal(ks[3], (4 * H,), jnp.float32) * 0.1
    b_hh = jax.random.normal(ks[4], (4 * H,), jnp.float32) * 0.1
    w1 = jax.random.normal(ks[5], (CH, 1, KH, H), jnp.float32) * 0.5
    w2 = jax.random.normal(ks[6], (CH, CH, 2), jnp.float32) * 0.5
    W3 = jax.random.normal(ks[7], (NOUT, FEAT), jnp.float32) * 0.1

    ref = reference_forward(x, W_ih, W_hh, b_ih, b_hh, w1, w2, W3)

    # tb=8 forces multiple LSTM time chunks (state carry across grid steps);
    # tq=2 forces multiple head tiles (fused-Linear accumulation across tiles).
    out = abstract_hybrid_forward(x, W_ih, W_hh, b_ih, b_hh, w1, w2, W3,
                                  tb=8, tq=2)
    out = jax.block_until_ready(out)
    assert out.shape == (B, NOUT), out.shape
    assert jnp.allclose(out, ref, atol=1e-3, rtol=1e-3), (
        f"max abs err = {jnp.max(jnp.abs(out - ref))}")

    # v7x-style 2-way batch-group split on the 'parallel' LSTM grid axis.
    out2 = abstract_hybrid_forward(x, W_ih, W_hh, b_ih, b_hh, w1, w2, W3,
                                   tb=8, tq=2, batch_groups=2)
    out2 = jax.block_until_ready(out2)
    assert jnp.allclose(out2, ref, atol=1e-3, rtol=1e-3), (
        f"max abs err = {jnp.max(jnp.abs(out2 - ref))}")

    print("KERNEL_OK")
</pallas_src>

<mosaic_0001>
module attributes {stable_mosaic.version = 11 : i64} {
  func.func @_lstm_kernel(%arg0: i32, %arg1: i32, %arg2: memref<6x16x512xf32, #tpu.memory_space<vmem>>, %arg3: memref<128x512xf32, #tpu.memory_space<vmem>>, %arg4: memref<6x16x128xf32, #tpu.memory_space<vmem>>, %arg5: memref<16x128xf32, #tpu.memory_space<vmem>>, %arg6: memref<16x128xf32, #tpu.memory_space<vmem>>) attributes {dimension_semantics = [#tpu.dimension_semantics<parallel>, #tpu.dimension_semantics<arbitrary>], iteration_bounds = array<i64: 1, 2>, scalar_prefetch = 0 : i64, scratch_operands = 2 : i64, tpu.core_type = #tpu.core_type<tc>, window_params = [{transform_indices = @transform_0, window_bounds = array<i64: 6, 16, 512>}, {pipeline_mode = #tpu.pipeline_mode<synchronous>, transform_indices = @transform_1, window_bounds = array<i64: 128, 512>}, {transform_indices = @transform_2, window_bounds = array<i64: 6, 16, 128>}]} {
    %c0_i32 = arith.constant 0 : i32
    %0 = arith.cmpi eq, %arg1, %c0_i32 : i32
    %1 = arith.extui %0 : i1 to i32
    %c0_i32_0 = arith.constant 0 : i32
    %2 = arith.cmpi ne, %1, %c0_i32_0 : i32
    scf.if %2 {
      %cst = arith.constant 0.000000e+00 : f32
      %4 = vector.broadcast %cst : f32 to vector<16x128xf32>
      %c0 = arith.constant 0 : index
      %c0_3 = arith.constant 0 : index
      %5 = vector.load %arg5[%c0, %c0_3] : memref<16x128xf32, #tpu.memory_space<vmem>>, vector<16x128xf32>
      tpu.vector_store %arg5[%c0, %c0_3], %4 {strides = array<i32>} : memref<16x128xf32, #tpu.memory_space<vmem>>, vector<16x128xf32>,
      %cst_4 = arith.constant 0.000000e+00 : f32
      %6 = vector.broadcast %cst_4 : f32 to vector<16x128xf32>
      %c0_5 = arith.constant 0 : index
      %c0_6 = arith.constant 0 : index
      %7 = vector.load %arg6[%c0_5, %c0_6] : memref<16x128xf32, #tpu.memory_space<vmem>>, vector<16x128xf32>
      tpu.vector_store %arg6[%c0_5, %c0_6], %6 {strides = array<i32>} : memref<16x128xf32, #tpu.memory_space<vmem>>, vector<16x128xf32>,
    } else {
    }
    %c0_i32_1 = arith.constant 0 : i32
    %c6_i32 = arith.constant 6 : i32
    %3 = arith.addi %c0_i32_1, %c6_i32 : i32
    %c1_i32 = arith.constant 1 : i32
    scf.for %arg7 = %c0_i32_1 to %3 step %c1_i32  : i32 {
      %4 = arith.index_cast %arg7 : i32 to index
      %c0 = arith.constant 0 : index
      %c0_3 = arith.constant 0 : index
      %5 = vector.load %arg2[%4, %c0, %c0_3] : memref<6x16x512xf32, #tpu.memory_space<vmem>>, vector<1x16x512xf32>
      %6 = vector.shape_cast %5 : vector<1x16x512xf32> to vector<16x512xf32>
      %c0_4 = arith.constant 0 : index
      %c0_5 = arith.constant 0 : index
      %7 = vector.load %arg5[%c0_4, %c0_5] : memref<16x128xf32, #tpu.memory_space<vmem>>, vector<16x128xf32>
      %c0_6 = arith.constant 0 : index
      %c0_7 = arith.constant 0 : index
      %8 = vector.load %arg3[%c0_6, %c0_7] : memref<128x512xf32, #tpu.memory_space<vmem>>, vector<128x512xf32>
      %cst = arith.constant dense<0.000000e+00> : vector<16x512xf32>
      %9 = tpu.matmul %7, %8, %cst {dimension_numbers = #tpu.dot_dimension_numbers<[1], [0], [0], [1], [0, 0, 1, 1], [], []>, precision = #tpu.contract_precision<fp32>} : vector<16x128xf32>, vector<128x512xf32>, vector<16x512xf32> -> vector<16x512xf32>
      %10 = arith.addf %6, %9 : vector<16x512xf32>
      %11 = vector.extract_strided_slice %10 {offsets = [0, 0], sizes = [16, 128], strides = [1, 1]} : vector<16x512xf32> to vector<16x128xf32>
      %12 = arith.negf %11 : vector<16x128xf32>
      %13 = math.exp %12 : vector<16x128xf32>
      %cst_8 = arith.constant 1.000000e+00 : f32
      %14 = vector.broadcast %cst_8 : f32 to vector<16x128xf32>
      %15 = arith.addf %14, %13 : vector<16x128xf32>
      %16 = arith.divf %14, %15 : vector<16x128xf32>
      %17 = vector.extract_strided_slice %10 {offsets = [0, 128], sizes = [16, 128], strides = [1, 1]} : vector<16x512xf32> to vector<16x128xf32>
      %18 = arith.negf %17 : vector<16x128xf32>
      %19 = math.exp %18 : vector<16x128xf32>
      %cst_9 = arith.constant 1.000000e+00 : f32
      %20 = vector.broadcast %cst_9 : f32 to vector<16x128xf32>
      %21 = arith.addf %20, %19 : vector<16x128xf32>
      %22 = arith.divf %20, %21 : vector<16x128xf32>
      %23 = vector.extract_strided_slice %10 {offsets = [0, 256], sizes = [16, 128], strides = [1, 1]} : vector<16x512xf32> to vector<16x128xf32>
      %24 = math.tanh %23 : vector<16x128xf32>
      %25 = vector.extract_strided_slice %10 {offsets = [0, 384], sizes = [16, 128], strides = [1, 1]} : vector<16x512xf32> to vector<16x128xf32>
      %26 = arith.negf %25 : vector<16x128xf32>
      %27 = math.exp %26 : vector<16x128xf32>
      %cst_10 = arith.constant 1.000000e+00 : f32
      %28 = vector.broadcast %cst_10 : f32 to vector<16x128xf32>
      %29 = arith.addf %28, %27 : vector<16x128xf32>
      %30 = arith.divf %28, %29 : vector<16x128xf32>
      %c0_11 = arith.constant 0 : index
      %c0_12 = arith.constant 0 : index
      %31 = vector.load %arg6[%c0_11, %c0_12] : memref<16x128xf32, #tpu.memory_space<vmem>>, vector<16x128xf32>
      %32 = arith.mulf %22, %31 : vector<16x128xf32>
      %33 = arith.mulf %16, %24 : vector<16x128xf32>
      %34 = arith.addf %32, %33 : vector<16x128xf32>
      %35 = math.tanh %34 : vector<16x128xf32>
      %36 = arith.mulf %30, %35 : vector<16x128xf32>
      %c0_13 = arith.constant 0 : index
      %c0_14 = arith.constant 0 : index
      %37 = vector.load %arg6[%c0_13, %c0_14] : memref<16x128xf32, #tpu.memory_space<vmem>>, vector<16x128xf32>
      tpu.vector_store %arg6[%c0_13, %c0_14], %34 {strides = array<i32>} : memref<16x128xf32, #tpu.memory_space<vmem>>, vector<16x128xf32>,
      %c0_15 = arith.constant 0 : index
      %c0_16 = arith.constant 0 : index
      %38 = vector.load %arg5[%c0_15, %c0_16] : memref<16x128xf32, #tpu.memory_space<vmem>>, vector<16x128xf32>
      tpu.vector_store %arg5[%c0_15, %c0_16], %36 {strides = array<i32>} : memref<16x128xf32, #tpu.memory_space<vmem>>, vector<16x128xf32>,
      %39 = arith.index_cast %arg7 : i32 to index
      %c0_17 = arith.constant 0 : index
      %c0_18 = arith.constant 0 : index
      %40 = vector.load %arg4[%39, %c0_17, %c0_18] : memref<6x16x128xf32, #tpu.memory_space<vmem>>, vector<1x16x128xf32>
      %41 = vector.shape_cast %40 : vector<1x16x128xf32> to vector<16x128xf32>
      %42 = vector.shape_cast %36 : vector<16x128xf32> to vector<1x16x128xf32>
      tpu.vector_store %arg4[%39, %c0_17, %c0_18], %42 {strides = array<i32>} : memref<6x16x128xf32, #tpu.memory_space<vmem>>, vector<1x16x128xf32>,
    }
    %c6_i32_2 = arith.constant 6 : i32
    return
  }
  func.func @transform_0(%arg0: i32, %arg1: i32) -> (i32, i32, i32) {
    %c0_i32 = arith.constant 0 : i32
    %c0_i32_0 = arith.constant 0 : i32
    return %arg1, %arg0, %c0_i32 : i32, i32, i32
  }
  func.func @transform_1(%arg0: i32, %arg1: i32) -> (i32, i32) {
    %c0_i32 = arith.constant 0 : i32
    %c0_i32_0 = arith.constant 0 : i32
    %c0_i32_1 = arith.constant 0 : i32
    return %c0_i32, %c0_i32_0 : i32, i32
  }
  func.func @transform_2(%arg0: i32, %arg1: i32) -> (i32, i32, i32) {
    %c0_i32 = arith.constant 0 : i32
    %c0_i32_0 = arith.constant 0 : i32
    return %arg1, %arg0, %c0_i32 : i32, i32, i32
  }
}

</mosaic_0001>

<bundles_post_ra>
// kernel: tpu_custom_call.1
= control target key start
LH: loop header
LB: loop body
LE: loop exit
PB: predicated region body
PF: predicated region fallthrough
CT: control target
= control target key end

     0   :  { %7 = vsyncpa [#allocation5], 0  ;;  %s4175_s0 = inlined_call_operand.hbm [shape: f32[12,16,512], index: 0, kind: input, shape index: {}]   ;;  %s4176_s1 = inlined_call_operand.hbm [shape: f32[128,512], index: 1, kind: input, shape index: {}]   ;;  %s4177_s2 = inlined_call_operand.hbm [shape: f32[12,16,128], index: 2, kind: output, shape index: {}]  }
   0x1   :  { %9 = vsyncpa [#allocation5 + $0x1], 0 }
   0x2   :  { %10 = vsyncpa [#allocation8], 0 }
   0x3   :  { %11 = vsyncpa [#allocation6], 0 }
   0x4   :  { %13 = vsyncpa [#allocation6 + $0x1], 0  ;;  %s3043_s9 = smov 0   ;;  %s3045_s10 = smov 0  }
   0x5   :  { %s3047_s11 = smov 0   ;;  %s3049_s12 = smov 0  }
   0x6   :  { %s3051_s13 = smov 0   ;;  %s3053_s14 = smov 0  }
   0x7 LB: > { %s2289_s15 = sadd.s32 4294967295, %s3013_s14   ;;  %s2290_s16 = sadd.s32 4294967294, %s3013_s14   ;;  %s3013_s14 = sphi %s3053_s14, %s19_s14   ;;  %s3009_s13 = sphi %s3051_s13, %s4646_s13   ;;  %s3005_s12 = sphi %s3049_s12, %s4645_s12   ;;  %s3001_s11 = sphi %s3047_s11, %s4644_s11   ;;  %s2997_s10 = sphi %s3045_s10, %s4643_s10   ;;  %s2993_s9 = sphi %s3043_s9, %s4642_s9  }
   0x8   : > { %p53_p0 = scmp.ne.s32.totalorder %s2997_s10, %s2993_s9  ;;  %p3077_p1 = scmp.eq.s32.totalorder %s2289_s15, 0 }
   0x9   : > { %p3081_p2 = scmp.eq.s32.totalorder %s2289_s15, 1  ;;  %p106_p3 = scmp.eq.s32.totalorder %s2290_s16, 1 }
   0xa   : > { %s4384_s17 = scalar_select %p3077_p1, 1, 0 }
   0xb   : > { %s4385_s18 = scalar_select %p3081_p2, 1, 0 }
   0xc   : > { %p3087_p4 = por %p3077_p1, %p53_p0  ;;  %p2291_p5 = scmp.ge.s32.totalorder %s3013_s14, 1 }
   0xd   : > { %p3092_p6 = por %p106_p3, %p53_p0  ;;  %p113_p7 = scmp.lt.s32.totalorder %s3013_s14, 3 }
   0xe   : > { %s4386_s19 = scalar_select %p3087_p4, 1, 0 }
   0xf   : > { %s4387_s20 = scalar_select %p3092_p6, 1, 0 }
  0x10   : > { %p3097_p8 = pnand %p2291_p5, %p113_p7  ;;  %s3019_s22 = smov [#allocation7]  }
  0x11   : > { %s125_s23 = sshll.u32 %s3019_s22, 4  ;;  %s28_s25 = sadd.s32 1, %s3009_s13  ;;  %s126_s23 = int_to_ptr.vmem [resolvable:$true] %s125_s23 }
  0x12   : > { %s4388_s21 = scalar_select %p3097_p8, 1, 0 }
  0x13   : > { %p2754_p9 = pneg %p3097_p8  ;;  %s2865_s28 = scalar_lea.hbm %s4176_s1, 8192 }
  0x14   : > { %p2866_p12 = scmp.ne.s32.totalorder %s4176_s1, %s2865_s28  ;;  %p2872_p5 = scmp.lt.u32.totalorder %s2865_s28, %s4176_s1 }
  0x15   : > { %p3106_p11 = pnand %p2754_p9, %p3077_p1 }
  0x17   : > { %p2867_p13 = pneg %p3106_p11 }
  0x19   : > { %p2868_p0 = pnand %p2867_p13, %p2866_p12 }
  0x1b   : > { %p2869_p3 = pneg %p2868_p0 }
  0x1d   : > { %p2874_p7 = pnand %p2872_p5, %p2869_p3 }
  0x1f   : > { %2877 = shalt.err (!%p2874_p7)
}
  0x20   : > { %s2878_s5 = scalar_lea.vmem %s126_s23, 8192  ;;  %p2886_p1 = scmp.lt.s32.totalorder %s126_s23, %s126_s23 }
  0x21   : > { %p2879_p9 = scmp.ne.s32.totalorder %s126_s23, %s2878_s5  ;;  %p2887_p4 = scmp.lt.s32.totalorder %s2878_s5, %s2878_s5 }
  0x23   : > { %p2881_p10 = pnand %p2879_p9, %p2867_p13  ;;  %p2888_p8 = por %p2887_p4, %p2886_p1 }
  0x25   : > { %p2882_p6 = pneg %p2881_p10 }
  0x27   : > { %p2889_p2 = pnand %p2888_p8, %p2882_p6 }
  0x29   : > { %2892 = shalt.err (!%p2889_p2)
}
  0x2a   : > { %s3020_s6 = smov 512   ;;  %s3021_s7 = smov 32  }
  0x2b   : > { %2757 = dma.hbm_to_vmem [thread:$0]  (!%p3106_p11), %s4176_s1, 8192, %s126_s23, [#allocation8], %s3020_s6, %s3020_s6, %s3021_s7  }
  0x2c   : > { %p29_p1 = scmp.ge.s32.totalorder %s28_s25, 2  ;;  %s40_s16 = sadd.s32 1, %s3001_s11 }
  0x2d   : > { %p47_p2 = scmp.ne.s32.totalorder %s3001_s11, %s2997_s10  ;;  %p48_p4 = scmp.eq.s32.totalorder %s3013_s14, 0 }
  0x2e   : > { %s4648_s25 = smov (%p29_p1, %s28_s25), 0  ;;  %p4390_p8 = scmp.ne.s32.totalorder %s4385_s18, 0 }
  0x2f   : > { %p49_p6 = por %p48_p4, %p47_p2  ;;  %s35_s24 = ssub.s32 %s3009_s13, %s4648_s25 }
  0x30   : > { %p3138_p10 = por %p4390_p8, %p47_p2  ;;  %p2767_p12 = scmp.lt.s32.totalorder %s3013_s14, 2 }
  0x31   : > { %p38_p13 = scmp.eq.s32.totalorder %s35_s24, 0  ;;  %s139_s26 = sand.u32 1, %s3001_s11  }
  0x32   : > { %s2743_s27 = smul.u32 384, %s139_s26  ;;  %p3150_p11 = pnand %p2767_p12, %p49_p6 }
  0x33   : > { %s3147_s28 = scalar_select %p38_p13, %s3001_s11, %s40_s16  }
  0x34   : > { %s2317_s23 = smul.u32 6144, %s3009_s13  ;;  %s143_s29 = scalar_lea.vmem [#allocation4], %s2743_s27 }
  0x35   : > { %s154_s30 = sshll.u32 %s143_s29, 4  ;;  %s3161_s8 = scalar_lea.sflag [#allocation5], %s139_s26  ;;  %s3159_s30 = int_to_ptr.vmem [resolvable:$true] %s154_s30 }
  0x36   : > { %s3157_s5 = scalar_lea.hbm %s4175_s0, %s2317_s23  ;;  %p2895_p3 = pneg %p3150_p11 }
  0x37   : > { %s2893_s15 = scalar_lea.hbm %s3157_s5, 6144  ;;  %s2898_s27 = scalar_lea.hbm %s4175_s0, 12288 }
  0x38   : > { %p2894_p0 = scmp.ne.s32.totalorder %s3157_s5, %s2893_s15  ;;  %p2899_p9 = scmp.lt.u32.totalorder %s3157_s5, %s4175_s0 }
  0x39   : > { %p2900_p1 = scmp.lt.u32.totalorder %s2898_s27, %s2893_s15  ;;  %p2902_p4 = scmp.lt.u32.totalorder %s2893_s15, %s3157_s5 }
  0x3a   : > { %p2896_p5 = pnand %p2895_p3, %p2894_p0 }
  0x3b   : > { %p2901_p2 = por %p2900_p1, %p2899_p9 }
  0x3c   : > { %p2897_p7 = pneg %p2896_p5 }
  0x3d   : > { %p2903_p6 = por %p2902_p4, %p2901_p2 }
  0x3f   : > { %p2904_p8 = pnand %p2903_p6, %p2897_p7 }
  0x41   : > { %2907 = shalt.err (!%p2904_p8)
}
  0x42   : > { %s2908_s26 = scalar_lea.vmem %s3159_s30, 6144  ;;  %s3022_s4 = smov [#allocation4]  }
  0x43   : > { %p2909_p12 = scmp.ne.s32.totalorder %s3159_s30, %s2908_s26  ;;  %s2913_s18 = sshll.u32 %s3022_s4, 4  ;;  %s2914_s18 = int_to_ptr.vmem [resolvable:$false] %s2913_s18 }
  0x44   : > { %s2915_s16 = scalar_lea.vmem %s2914_s18, 12288  ;;  %p2916_p5 = scmp.lt.s32.totalorder %s3159_s30, %s2914_s18 }
  0x45   : > { %p2911_p13 = pnand %p2909_p12, %p2895_p3  ;;  %p2917_p9 = scmp.lt.s32.totalorder %s2915_s16, %s2908_s26 }
  0x47   : > { %p2912_p0 = pneg %p2911_p13  ;;  %p2918_p1 = por %p2917_p9, %p2916_p5 }
  0x49   : > { %p2919_p2 = pnand %p2918_p1, %p2912_p0 }
  0x4b   : > { %2922 = shalt.err (!%p2919_p2)
}
  0x4c   : > { %2761 = dma.hbm_to_vmem [thread:$0]  (!%p3150_p11), %s3157_s5, 6144, %s3159_s30, %s3161_s8, %s3020_s6, %s3020_s6, %s3021_s7  }
  0x4d   : > { %p4393_p3 = scmp.ne.s32.totalorder %s4388_s21, 0 }
  0x4e   : > { %s3195_s15 = sand.u32 (!%p4393_p3), 1, %s2997_s10   ;;  %p4394_p7 = scmp.ne.s32.totalorder (!%p4393_p3), %s4386_s19, 0 }
  0x4f   : > { %166 = sbr.rel (%p4393_p3) target bundleno = 618 (0x26a), region = 28  ;;  %s169_s27 = scalar_lea.sflag (!%p4393_p3), [#allocation5], %s3195_s15 }
  0x50   : > { %s2744_s24 = smul.u32 (!%p4393_p3), 384, %s3195_s15 }
  0x52   : > { %s3199_s23 = scalar_lea.vmem (!%p4393_p3), [#allocation4], %s2744_s24 }
  0x56   : > { %2980 = dma.done.wait (%p4394_p7), %s169_s27, 6144  }
  0x57   : > { %2982 = vsyncadd (%p4394_p7), %s169_s27, 4294961152  ;;  %p4395_p11 = scmp.ne.s32.totalorder %s4384_s17, 0 }
  0x59   : > { %2984 = dma.done.wait (%p4395_p11), [#allocation8], 8192  }
  0x5a   : > { %2986 = vsyncadd (%p4395_p11), [#allocation8], 4294959104  ;;  %s2745_s21 = smul.u32 96, %s3195_s15  ;;  %p2298_p4 = scmp.ne.s32.totalorder %s3005_s12, 0 }
  0x5b   : > { %v3023_v0 = vmov (!%p2298_p4), 0.0  }
  0x5c   : > { %s3210_s6 = scalar_lea.vmem [#allocation9], %s2745_s21  ;;  %204 = sbr.rel (%p2298_p4) target bundleno = 99 (0x63), region = 40  ;;  %205 = vst [vmem:[#allocation2] sm:$0xff] (!%p2298_p4), %v3023_v0  ;;  %206 = vst [vmem:[#allocation2 + $0x8] sm:$0xff] (!%p2298_p4), %v3023_v0 }
  0x5d   : > { %207 = vst [vmem:[#allocation3] sm:$0xff] (!%p2298_p4), %v3023_v0  ;;  %208 = vst [vmem:[#allocation3 + $0x8] sm:$0xff] (!%p2298_p4), %v3023_v0 }
  0x63 PF: > { %s3213_s19 = smov 0  }
  0x64 LB: >> { %v229_v1 = vld [vmem:[#allocation7 + $0x8] sm:$0xff]  ;;  %v231_v3 = vld [vmem:[#allocation7 + $0x18] sm:$0xff]  ;;  %v228_v8 = vld [vmem:[#allocation7] sm:$0xff]  ;;  %v4182_v10 = vmov 0.0   ;;  %s2314_s17 = sshll.u32 %s3017_s19, 6  ;;  %s2307_s30 = sshll.u32 %s3017_s19, 4  ;;  %s3017_s19 = sphi %s3213_s19, %s214_s19  }
  0x65   : >> { %v233_v2 = vld [vmem:[#allocation7 + $0x28] sm:$0xff]  ;;  %v292_v4 = vand.u32 4294901760, %v229_v1  ;;  %v235_v6 = vld [vmem:[#allocation7 + $0x38] sm:$0xff]  ;;  %v1196_v7 = vand.u32 4294901760, %v231_v3  ;;  %v232_v9 = vld [vmem:[#allocation7 + $0x20] sm:$0xff]  ;;  %388 = vmatprep.mubr.f32.mxu0 %v4182_v10  ;;  %1292 = vmatprep.mubr.f32.mxu1 %v4182_v10  ;;  %v294_v12 = vand.u32 4294901760, %v228_v8  ;;  %s4104_s7 = scalar_lea.vmem %s3199_s23, %s2314_s17 [#allocation4]  ;;  %s2163_s3 = scalar_lea.vmem %s3210_s6, %s2307_s30 [#allocation9] }
  0x66   : >> { %v296_v5 = vand.u32 4294901760, %v233_v2  ;;  %v1200_v11 = vand.u32 4294901760, %v235_v6  ;;  %v298_v13 = vand.u32 4294901760, %v232_v9  ;;  %v230_v14 = vld [vmem:[#allocation7 + $0x10] sm:$0xff]  ;;  %v237_v16 = vld [vmem:[#allocation7 + $0x48] sm:$0xff]  ;;  %v239_v22 = vld [vmem:[#allocation7 + $0x58] sm:$0xff] }
  0x67   : >> { %v234_v15 = vld [vmem:[#allocation7 + $0x30] sm:$0xff]  ;;  %v3222_v18 = vsub.f32 %v229_v1, %v292_v4  ;;  %v3226_v20 = vsub.f32 %v231_v3, %v1196_v7  ;;  %v241_v21 = vld [vmem:[#allocation7 + $0x68] sm:$0xff]  ;;  %v243_v23 = vld [vmem:[#allocation7 + $0x78] sm:$0xff]  ;;  %v3234_v27 = vsub.f32 %v228_v8, %v294_v12  ;;  %v1198_v30 = vand.u32 4294901760, %v230_v14  ;;  %s214_s19 = sadd.s32 1, %s3017_s19  }
  0x68   : >> { %v3220_v17 = vpack.c.bf16 %v296_v5, %v292_v4  ;;  %v3224_v19 = vsub.f32 %v233_v2, %v296_v5  ;;  %v3228_v24 = vpack.c.bf16 %v1200_v11, %v1196_v7  ;;  %v3230_v25 = vsub.f32 %v235_v6, %v1200_v11  ;;  %v236_v28 = vld [vmem:[#allocation7 + $0x40] sm:$0xff]  ;;  %v238_v38 = vld [vmem:[#allocation7 + $0x50] sm:$0xff]  ;;  %v245_v44 = vld [vmem:[#allocation7 + $0x88] sm:$0xff]  ;;  %p211_p6 = scmp.ge.s32.totalorder %s214_s19, 6  }
  0x69   : >> { %4397 = vst [vmem:[#allocation14_spill] sm:$0xff] %v3222_v18  ;;  %4399 = vst [vmem:[#allocation16_spill] sm:$0xff] %v3226_v20  ;;  %v3232_v26 = vpack.c.bf16 %v298_v13, %v294_v12  ;;  %v3237_v29 = vsub.f32 %v232_v9, %v298_v13  ;;  %v1202_v31 = vand.u32 4294901760, %v234_v15  ;;  %v300_v32 = vand.u32 4294901760, %v237_v16  ;;  %v240_v33 = vld [vmem:[#allocation7 + $0x60] sm:$0xff]  ;;  %v242_v39 = vld [vmem:[#allocation7 + $0x70] sm:$0xff] }
  0x6a   : >> { %4396 = vst [vmem:[#allocation13_spill] sm:$0xff] %v3220_v17  ;;  %4398 = vst [vmem:[#allocation15_spill] sm:$0xff] %v3224_v19  ;;  %2320 = vmatprep.subr.bf16.mxu0 %v3220_v17  ;;  %2512 = vmatprep.subr.bf16.mxu1 %v3228_v24  ;;  %v304_v34 = vand.u32 4294901760, %v241_v21  ;;  %v1204_v35 = vand.u32 4294901760, %v239_v22  ;;  %v1208_v36 = vand.u32 4294901760, %v243_v23  ;;  %v302_v37 = vand.u32 4294901760, %v236_v28 }
  0x6b   : >> { %4400 = vst [vmem:[#allocation17_spill] sm:$0xff] %v3228_v24  ;;  %4401 = vst [vmem:[#allocation18_spill] sm:$0xff] %v3230_v25  ;;  %2322 = vmatpush1.bf16.msra.mxu0 %v3232_v26  ;;  %v3241_v40 = vpack.c.bf16 %v1202_v31, %v1198_v30  ;;  %v3243_v41 = vsub.f32 %v230_v14, %v1198_v30  ;;  %v3245_v42 = vsub.f32 %v234_v15, %v1202_v31  ;;  %v249_v45 = vld [vmem:[#allocation7 + $0xa8] sm:$0xff]  ;;  %v247_v46 = vld [vmem:[#allocation7 + $0x98] sm:$0xff]  ;;  %s2318_s5 = smul.u32 (%p211_p6), 1536, %s3005_s12  ;;  %s2183_s8 = sshll.u32 (%p211_p6), %s3210_s6, 4  ;;  %s4126_s8 = int_to_ptr.vmem [resolvable:$true] %s2183_s8 }
  0x6c   : >> { %4402 = vst [vmem:[#allocation19_spill] sm:$0xff] %v3232_v26  ;;  %4403 = vst [vmem:[#allocation20_spill] sm:$0xff] %v3234_v27  ;;  %v3247_v43 = vsub.f32 %v237_v16, %v300_v32  ;;  %v3249_v47 = vpack.c.bf16 %v304_v34, %v300_v32  ;;  %v3251_v48 = vsub.f32 %v241_v21, %v304_v34  ;;  %v251_v51 = vld [vmem:[#allocation7 + $0xb8] sm:$0xff]  ;;  %v306_v53 = vand.u32 4294901760, %v240_v33  ;;  %v244_v60 = vld [vmem:[#allocation7 + $0x80] sm:$0xff]  ;;  %s2167_s18 = scalar_lea.sflag (%p211_p6), [#allocation6], %s3195_s15 }
  0x6d   : >> { %4404 = vst [vmem:[#allocation21_spill] sm:$0xff] %v3237_v29  ;;  %4405 = vst [vmem:[#allocation22_spill] sm:$0xff] %v3241_v40  ;;  %v3253_v49 = vpack.c.bf16 %v1208_v36, %v1204_v35  ;;  %v3255_v50 = vsub.f32 %v239_v22, %v1204_v35  ;;  %2514 = vmatpush1.bf16.msra.mxu1 %v3241_v40  ;;  %v3258_v52 = vsub.f32 %v243_v23, %v1208_v36  ;;  %v248_v61 = vld [vmem:[#allocation7 + $0xa0] sm:$0xff]  ;;  %v246_v2 = vld [vmem:[#allocation7 + $0x90] sm:$0xff]  ;;  %s4124_s4 = scalar_lea.hbm (%p211_p6), %s4177_s2, %s2318_s5  ;;  %s2923_s16 = scalar_lea.vmem (%p211_p6), %s4126_s8, 1536 }
  0x6e   : >> { %4406 = vst [vmem:[#allocation23_spill] sm:$0xff] %v3243_v41  ;;  %4407 = vst [vmem:[#allocation24_spill] sm:$0xff] %v3245_v42  ;;  %v3260_v54 = vsub.f32 %v236_v28, %v302_v37  ;;  %v1206_v55 = vand.u32 4294901760, %v238_v38  ;;  %2324 = vmatprep.subr.bf16.mxu0 %v3249_v47  ;;  %v1210_v56 = vand.u32 4294901760, %v242_v39  ;;  %v308_v57 = vand.u32 4294901760, %v245_v44  ;;  %v250_v3 = vld [vmem:[#allocation7 + $0xb0] sm:$0xff]  ;;  %p2924_p8 = scmp.ne.s32.totalorder (%p211_p6), %s4126_s8, %s2923_s16 }
  0x6f   : >> { %4408 = vst [vmem:[#allocation25_spill] sm:$0xff] %v3249_v47  ;;  %4409 = vst [vmem:[#allocation26_spill] sm:$0xff] %v3253_v49  ;;  %2516 = vmatprep.subr.bf16.mxu1 %v3253_v49  ;;  %v312_v58 = vand.u32 4294901760, %v249_v45  ;;  %v1212_v59 = vand.u32 4294901760, %v247_v46  ;;  %v3264_v62 = vpack.c.bf16 %v306_v53, %v302_v37  ;;  %v3266_v63 = vsub.f32 %v240_v33, %v306_v53  ;;  %v253_v4 = vld [vmem:[#allocation7 + $0xc8] sm:$0xff]  ;;  %v255_v11 = vld [vmem:[#allocation7 + $0xd8] sm:$0xff] }
  0x70   : >> { %v3268_v0 = vsub.f32 %v238_v38, %v1206_v55  ;;  %v1216_v1 = vand.u32 4294901760, %v251_v51  ;;  %v3270_v5 = vpack.c.bf16 %v1210_v56, %v1206_v55  ;;  %v3272_v6 = vsub.f32 %v242_v39, %v1210_v56  ;;  %v257_v9 = vld [vmem:[#allocation7 + $0xe8] sm:$0xff]  ;;  %v259_v12 = vld [vmem:[#allocation7 + $0xf8] sm:$0xff]  ;;  %v252_v34 = vld [vmem:[#allocation7 + $0xc0] sm:$0xff]  ;;  %p2925_p12 = pnand (%p211_p6), %p2924_p8, %p3138_p10  ;;  %s3025_s24 = smov (%p211_p6), [#allocation9]  }
  0x71   : >> { %4410 = vst [vmem:[#allocation27_spill] sm:$0xff] %v3264_v62  ;;  %v3274_v7 = vpack.c.bf16 %v312_v58, %v308_v57  ;;  %v3276_v8 = vsub.f32 %v245_v44, %v308_v57  ;;  %2326 = vmatpush1.bf16.msra.mxu0 %v3264_v62  ;;  %v3279_v13 = vsub.f32 %v249_v45, %v312_v58  ;;  %v310_v21 = vand.u32 4294901760, %v244_v60  ;;  %v256_v39 = vld [vmem:[#allocation7 + $0xe0] sm:$0xff]  ;;  %v254_v44 = vld [vmem:[#allocation7 + $0xd0] sm:$0xff]  ;;  %v261_v56 = vld [vmem:[#allocation7 + $0x108] sm:$0xff]  ;;  %s2927_s27 = sshll.u32 (%p211_p6), %s3025_s24, 4  ;;  %s2928_s27 = int_to_ptr.vmem [resolvable:$false] %s2927_s27 }
  0x72   : >> { %4411 = vst [vmem:[#allocation28_spill] sm:$0xff] %v3270_v5  ;;  %v3281_v14 = vpack.c.bf16 %v1216_v1, %v1212_v59  ;;  %v3283_v15 = vsub.f32 %v247_v46, %v1212_v59  ;;  %v3285_v16 = vsub.f32 %v251_v51, %v1216_v1  ;;  %2518 = vmatpush1.bf16.msra.mxu1 %v3270_v5  ;;  %v314_v22 = vand.u32 4294901760, %v248_v61  ;;  %v258_v45 = vld [vmem:[#allocation7 + $0xf0] sm:$0xff]  ;;  %v265_v57 = vld [vmem:[#allocation7 + $0x128] sm:$0xff]  ;;  %v263_v58 = vld [vmem:[#allocation7 + $0x118] sm:$0xff]  ;;  %p2926_p13 = pneg (%p211_p6), %p2925_p12  ;;  %s2929_s12 = scalar_lea.vmem (%p211_p6), %s2928_s27, 3072 }
  0x73   : >> { %4412 = vst [vmem:[#allocation29_spill] sm:$0xff] %v3274_v7  ;;  %2328 = vmatprep.subr.bf16.mxu0 %v3274_v7  ;;  %v1214_v23 = vand.u32 4294901760, %v246_v2  ;;  %v1218_v28 = vand.u32 4294901760, %v250_v3  ;;  %v316_v30 = vand.u32 4294901760, %v253_v4  ;;  %v320_v31 = vand.u32 4294901760, %v257_v9  ;;  %v264_v10 = vld [vmem:[#allocation7 + $0x120] sm:$0xff]  ;;  %p2930_p0 = scmp.lt.s32.totalorder (%p211_p6), %s4126_s8, %s2928_s27  ;;  %p2931_p5 = scmp.lt.s32.totalorder (%p211_p6), %s2929_s12, %s2923_s16 }
  0x74   : >> { %4413 = vst [vmem:[#allocation30_spill] sm:$0xff] %v3281_v14  ;;  %2520 = vmatprep.subr.bf16.mxu1 %v3281_v14  ;;  %v1220_v32 = vand.u32 4294901760, %v255_v11  ;;  %v1224_v33 = vand.u32 4294901760, %v259_v12  ;;  %v3290_v35 = vpack.c.bf16 %v314_v22, %v310_v21  ;;  %v3292_v36 = vsub.f32 %v244_v60, %v310_v21  ;;  %v273_v14 = vld [vmem:[#allocation7 + $0x168] sm:$0xff]  ;;  %v271_v49 = vld [vmem:[#allocation7 + $0x158] sm:$0xff]  ;;  %v270_v47 = vld [vmem:[#allocation7 + $0x150] sm:$0xff] }
  0x75   : >> { %v3294_v37 = vsub.f32 %v248_v61, %v314_v22  ;;  %v3296_v38 = vpack.c.bf16 %v1218_v28, %v1214_v23  ;;  %v3298_v46 = vsub.f32 %v246_v2, %v1214_v23  ;;  %v3300_v51 = vsub.f32 %v250_v3, %v1218_v28  ;;  %v267_v22 = vld [vmem:[#allocation7 + $0x138] sm:$0xff]  ;;  %v274_v17 = vld [vmem:[#allocation7 + $0x170] sm:$0xff]  ;;  %p2932_p9 = por (%p211_p6), %p2931_p5, %p2930_p0 }
  0x76   : >> { %4414 = vst [vmem:[#allocation31_spill] sm:$0xff] %v3290_v35  ;;  %v3302_v53 = vpack.c.bf16 %v320_v31, %v316_v30  ;;  %v3304_v55 = vsub.f32 %v253_v4, %v316_v30  ;;  %2330 = vmatpush1.bf16.msra.mxu0 %v3290_v35  ;;  %v3308_v59 = vsub.f32 %v257_v9, %v320_v31  ;;  %v318_v1 = vand.u32 4294901760, %v252_v34  ;;  %v260_v31 = vld [vmem:[#allocation7 + $0x100] sm:$0xff]  ;;  %v269_v35 = vld [vmem:[#allocation7 + $0x148] sm:$0xff] }
  0x77   : >> { %4415 = vst [vmem:[#allocation32_spill] sm:$0xff] %v3296_v38  ;;  %2522 = vmatpush1.bf16.msra.mxu1 %v3296_v38  ;;  %v3310_v60 = vpack.c.bf16 %v1224_v33, %v1220_v32  ;;  %v3312_v61 = vsub.f32 %v255_v11, %v1220_v32  ;;  %v3315_v2 = vsub.f32 %v259_v12, %v1224_v33  ;;  %v322_v3 = vand.u32 4294901760, %v256_v39  ;;  %v262_v11 = vld [vmem:[#allocation7 + $0x110] sm:$0xff]  ;;  %p2933_p1 = pnand (%p211_p6), %p2932_p9, %p2926_p13 }
  0x78   : >> { %4416 = vst [vmem:[#allocation33_spill] sm:$0xff] %v3302_v53  ;;  %2332 = vmatprep.subr.bf16.mxu0 %v3302_v53  ;;  %v1222_v4 = vand.u32 4294901760, %v254_v44  ;;  %v1226_v21 = vand.u32 4294901760, %v258_v45  ;;  %v3318_v23 = vsub.f32 %v252_v34, %v318_v1  ;;  %v324_v28 = vand.u32 4294901760, %v261_v56  ;;  %v266_v53 = vld [vmem:[#allocation7 + $0x130] sm:$0xff] }
  0x79   : >> { %4417 = vst [vmem:[#allocation34_spill] sm:$0xff] %v3310_v60  ;;  %2524 = vmatprep.subr.bf16.mxu1 %v3310_v60  ;;  %v328_v9 = vand.u32 4294901760, %v265_v57  ;;  %v1228_v30 = vand.u32 4294901760, %v263_v58  ;;  %v3320_v32 = vpack.c.bf16 %v322_v3, %v318_v1  ;;  %v3322_v38 = vsub.f32 %v256_v39, %v322_v3 }
  0x7a   : >> { %v3324_v12 = vpack.c.bf16 %v1226_v21, %v1222_v4  ;;  %v3326_v33 = vsub.f32 %v254_v44, %v1222_v4  ;;  %v3328_v60 = vsub.f32 %v258_v45, %v1226_v21  ;;  %v3332_v7 = vsub.f32 %v261_v56, %v324_v28  ;;  %v275_v56 = vld [vmem:[#allocation7 + $0x178] sm:$0xff] }
  0x7b   : >> { %4418 = vst [vmem:[#allocation35_spill] sm:$0xff] %v3320_v32  ;;  %4419 = vst [vmem:[#allocation36_spill] sm:$0xff] %v3322_v38  ;;  %v3330_v34 = vpack.c.bf16 %v328_v9, %v324_v28  ;;  %v3334_v5 = vsub.f32 %v265_v57, %v328_v9  ;;  %2334 = vmatpush1.bf16.msra.mxu0 %v3320_v32  ;;  %v1232_v39 = vand.u32 4294901760, %v267_v22  ;;  %v326_v44 = vand.u32 4294901760, %v260_v31  ;;  %v272_v32 = vld [vmem:[#allocation7 + $0x160] sm:$0xff] }
  0x7c   : >> { %4420 = vst [vmem:[#allocation37_spill] sm:$0xff] %v3324_v12  ;;  %4421 = vst [vmem:[#allocation38_spill] sm:$0xff] %v3326_v33  ;;  %2526 = vmatpush1.bf16.msra.mxu1 %v3324_v12  ;;  %v3338_v1 = vsub.f32 %v263_v58, %v1228_v30  ;;  %v330_v3 = vand.u32 4294901760, %v264_v10  ;;  %v1230_v4 = vand.u32 4294901760, %v262_v11  ;;  %v1234_v45 = vand.u32 4294901760, %v266_v53  ;;  %v268_v58 = vld [vmem:[#allocation7 + $0x140] sm:$0xff] }
  0x7d   : >> { %4422 = vst [vmem:[#allocation39_spill] sm:$0xff] %v3328_v60  ;;  %4423 = vst [vmem:[#allocation40_spill] sm:$0xff] %v3330_v34  ;;  %2336 = vmatprep.subr.bf16.mxu0 %v3330_v34  ;;  %v332_v21 = vand.u32 4294901760, %v269_v35  ;;  %v336_v62 = vand.u32 4294901760, %v273_v14  ;;  %v3341_v28 = vpack.c.bf16 %v1232_v39, %v1228_v30  ;;  %v3343_v57 = vsub.f32 %v267_v22, %v1232_v39  ;;  %v277_v30 = vld [vmem:[#allocation7 + $0x188] sm:$0xff] }
  0x7e   : >> { %4424 = vst [vmem:[#allocation41_spill] sm:$0xff] %v3332_v7  ;;  %4425 = vst [vmem:[#allocation42_spill] sm:$0xff] %v3334_v5  ;;  %v3345_v9 = vpack.c.bf16 %v330_v3, %v326_v44  ;;  %v3347_v12 = vsub.f32 %v260_v31, %v326_v44  ;;  %v3349_v40 = vsub.f32 %v264_v10, %v330_v3  ;;  %v1236_v10 = vand.u32 4294901760, %v271_v49 }
  0x7f   : >> { %4426 = vst [vmem:[#allocation43_spill] sm:$0xff] %v3338_v1  ;;  %4427 = vst [vmem:[#allocation44_spill] sm:$0xff] %v3341_v28  ;;  %v3351_v34 = vpack.c.bf16 %v1234_v45, %v1230_v4  ;;  %v3353_v26 = vsub.f32 %v262_v11, %v1230_v4  ;;  %v3355_v24 = vsub.f32 %v266_v53, %v1234_v45  ;;  %v281_v1 = vld [vmem:[#allocation7 + $0x1a8] sm:$0xff]  ;;  %2528 = vmatprep.subr.bf16.mxu1 %v3341_v28 }
  0x80   : >> { %4428 = vst [vmem:[#allocation45_spill] sm:$0xff] %v3343_v57  ;;  %4429 = vst [vmem:[#allocation46_spill] sm:$0xff] %v3345_v9  ;;  %2338 = vmatpush1.bf16.msra.mxu0 %v3345_v9  ;;  %v3359_v22 = vpack.c.bf16 %v336_v62, %v332_v21  ;;  %v3361_v31 = vsub.f32 %v269_v35, %v332_v21  ;;  %v3363_v39 = vsub.f32 %v273_v14, %v336_v62  ;;  %v289_v57 = vld [vmem:[#allocation7 + $0x1e8] sm:$0xff] }
  0x81   : >> { %4430 = vst [vmem:[#allocation47_spill] sm:$0xff] %v3347_v12  ;;  %4431 = vst [vmem:[#allocation48_spill] sm:$0xff] %v3349_v40  ;;  %2530 = vmatpush1.bf16.msra.mxu1 %v3351_v34  ;;  %v1240_v11 = vand.u32 4294901760, %v275_v56  ;;  %v334_v44 = vand.u32 4294901760, %v268_v58  ;;  %v338_v53 = vand.u32 4294901760, %v272_v32  ;;  %v1238_v3 = vand.u32 4294901760, %v270_v47 }
  0x82   : >> { %4432 = vst [vmem:[#allocation49_spill] sm:$0xff] %v3351_v34  ;;  %4433 = vst [vmem:[#allocation50_spill] sm:$0xff] %v3353_v26  ;;  %2340 = vmatprep.subr.bf16.mxu0 %v3359_v22  ;;  %v3367_v4 = vsub.f32 %v271_v49, %v1236_v10  ;;  %v1242_v45 = vand.u32 4294901760, %v274_v17  ;;  %v340_v28 = vand.u32 4294901760, %v277_v30  ;;  %v344_v9 = vand.u32 4294901760, %v281_v1  ;;  %v283_v26 = vld [vmem:[#allocation7 + $0x1b8] sm:$0xff] }
  0x83   : >> { %4434 = vst [vmem:[#allocation51_spill] sm:$0xff] %v3355_v24  ;;  %4435 = vst [vmem:[#allocation52_spill] sm:$0xff] %v3359_v22  ;;  %v279_v24 = vld [vmem:[#allocation7 + $0x198] sm:$0xff]  ;;  %v3369_v35 = vpack.c.bf16 %v1240_v11, %v1236_v10  ;;  %v3371_v62 = vsub.f32 %v275_v56, %v1240_v11  ;;  %v3373_v14 = vpack.c.bf16 %v338_v53, %v334_v44  ;;  %v276_v34 = vld [vmem:[#allocation7 + $0x180] sm:$0xff] }
  0x84   : >> { %4436 = vst [vmem:[#allocation53_spill] sm:$0xff] %v3361_v31  ;;  %4437 = vst [vmem:[#allocation54_spill] sm:$0xff] %v3363_v39  ;;  %v3375_v21 = vsub.f32 %v268_v58, %v334_v44  ;;  %v280_v39 = vld [vmem:[#allocation7 + $0x1a0] sm:$0xff]  ;;  %v278_v31 = vld [vmem:[#allocation7 + $0x190] sm:$0xff]  ;;  %v3377_v40 = vsub.f32 %v272_v32, %v338_v53  ;;  %v3379_v49 = vpack.c.bf16 %v1242_v45, %v1238_v3  ;;  %v1244_v32 = vand.u32 4294901760, %v279_v24 }
  0x85   : >> { %4438 = vst [vmem:[#allocation55_spill] sm:$0xff] %v3367_v4  ;;  %4439 = vst [vmem:[#allocation56_spill] sm:$0xff] %v3369_v35  ;;  %v3381_v22 = vsub.f32 %v270_v47, %v1238_v3  ;;  %v3383_v4 = vsub.f32 %v274_v17, %v1242_v45  ;;  %v282_v12 = vld [vmem:[#allocation7 + $0x1b0] sm:$0xff]  ;;  %v285_v10 = vld [vmem:[#allocation7 + $0x1c8] sm:$0xff]  ;;  %2532 = vmatprep.subr.bf16.mxu1 %v3369_v35  ;;  %2342 = vmatpush1.bf16.msra.mxu0 %v3373_v14  ;;  %v1248_v47 = vand.u32 4294901760, %v283_v26 }
  0x86   : >> { %4440 = vst [vmem:[#allocation57_spill] sm:$0xff] %v3371_v62  ;;  %4441 = vst [vmem:[#allocation58_spill] sm:$0xff] %v3373_v14  ;;  %v3387_v56 = vpack.c.bf16 %v344_v9, %v340_v28  ;;  %v3389_v58 = vsub.f32 %v277_v30, %v340_v28  ;;  %v3391_v11 = vsub.f32 %v281_v1, %v344_v9  ;;  %2534 = vmatpush1.bf16.msra.mxu1 %v3379_v49 }
  0x87   : >> { %4442 = vst [vmem:[#allocation59_spill] sm:$0xff] %v3375_v21  ;;  %4443 = vst [vmem:[#allocation60_spill] sm:$0xff] %v3377_v40  ;;  %v342_v44 = vand.u32 4294901760, %v276_v34  ;;  %v346_v17 = vand.u32 4294901760, %v280_v39  ;;  %v1246_v53 = vand.u32 4294901760, %v278_v31  ;;  %v3395_v3 = vsub.f32 %v279_v24, %v1244_v32  ;;  %v290_v21 = vld [vmem:[#allocation7 + $0x1f0] sm:$0xff] }
  0x88   : >> { %4444 = vst [vmem:[#allocation61_spill] sm:$0xff] %v3379_v49  ;;  %4445 = vst [vmem:[#allocation62_spill] sm:$0xff] %v3381_v22  ;;  %2344 = vmatprep.subr.bf16.mxu0 %v3387_v56  ;;  %v1250_v45 = vand.u32 4294901760, %v282_v12  ;;  %v348_v35 = vand.u32 4294901760, %v285_v10  ;;  %v352_v14 = vand.u32 4294901760, %v289_v57  ;;  %v291_v22 = vld [vmem:[#allocation7 + $0x1f8] sm:$0xff]  ;;  %v3397_v28 = vpack.c.bf16 %v1248_v47, %v1244_v32 }
  0x89   : >> { %4446 = vst [vmem:[#allocation63_spill] sm:$0xff] %v3383_v4  ;;  %4447 = vst [vmem:[#allocation64_spill] sm:$0xff] %v3387_v56  ;;  %v287_v4 = vld [vmem:[#allocation7 + $0x1d8] sm:$0xff]  ;;  %v3399_v1 = vsub.f32 %v283_v26, %v1248_v47  ;;  %v3401_v9 = vpack.c.bf16 %v346_v17, %v342_v44  ;;  %v3403_v30 = vsub.f32 %v276_v34, %v342_v44  ;;  %v284_v49 = vld [vmem:[#allocation7 + $0x1c0] sm:$0xff] }
  0x8a   : >> { %4448 = vst [vmem:[#allocation65_spill] sm:$0xff] %v3389_v58  ;;  %4449 = vst [vmem:[#allocation66_spill] sm:$0xff] %v3391_v11  ;;  %v288_v11 = vld [vmem:[#allocation7 + $0x1e0] sm:$0xff]  ;;  %v286_v58 = vld [vmem:[#allocation7 + $0x1d0] sm:$0xff]  ;;  %v3405_v40 = vsub.f32 %v280_v39, %v346_v17  ;;  %v3407_v24 = vpack.c.bf16 %v1250_v45, %v1246_v53  ;;  %v3409_v56 = vsub.f32 %v278_v31, %v1246_v53  ;;  %2536 = vmatprep.subr.bf16.mxu1 %v3397_v28 }
  0x8b   : >> { %4450 = vst [vmem:[#allocation67_spill] sm:$0xff] %v3395_v3  ;;  %4451 = vst [vmem:[#allocation68_spill] sm:$0xff] %v3397_v28  ;;  %v3411_v3 = vsub.f32 %v282_v12, %v1250_v45  ;;  %2346 = vmatpush1.bf16.msra.mxu0 %v3401_v9  ;;  %v3415_v26 = vpack.c.bf16 %v352_v14, %v348_v35  ;;  %v3417_v34 = vsub.f32 %v285_v10, %v348_v35 }
  0x8c   : >> { %4452 = vst [vmem:[#allocation69_spill] sm:$0xff] %v3401_v9  ;;  %4453 = vst [vmem:[#allocation70_spill] sm:$0xff] %v3407_v24  ;;  %v3419_v32 = vsub.f32 %v289_v57, %v352_v14  ;;  %v1252_v47 = vand.u32 4294901760, %v287_v4  ;;  %2538 = vmatpush1.bf16.msra.mxu1 %v3407_v24  ;;  %v1256_v39 = vand.u32 4294901760, %v291_v22  ;;  %v350_v44 = vand.u32 4294901760, %v284_v49  ;;  %v226_v24 = vld [vmem:[#allocation2] sm:$0xff] }
  0x8d   : >> { %4454 = vst [vmem:[#allocation71_spill] sm:$0xff] %v3415_v26  ;;  %4455 = vst [vmem:[#allocation72_spill] sm:$0xff] %v3417_v34  ;;  %v354_v31 = vand.u32 4294901760, %v288_v11  ;;  %v1254_v17 = vand.u32 4294901760, %v286_v58  ;;  %2348 = vmatprep.subr.bf16.mxu0 %v3415_v26  ;;  %v1258_v53 = vand.u32 4294901760, %v290_v21  ;;  %v4260_v45 = vand.u32 4294901760, %v3222_v18 }
  0x8e   : >> { %4456 = vst [vmem:[#allocation73_spill] sm:$0xff] %v3419_v32  ;;  %v3423_v12 = vsub.f32 %v287_v4, %v1252_v47  ;;  %v4259_v9 = vand.u32 4294901760, %v3224_v19  ;;  %v3427_v35 = vpack.c.bf16 %v1256_v39, %v1252_v47  ;;  %v3429_v57 = vsub.f32 %v291_v22, %v1256_v39 }
  0x8f   : >> { %v3431_v14 = vpack.c.bf16 %v354_v31, %v350_v44  ;;  %v3433_v10 = vsub.f32 %v284_v49, %v350_v44  ;;  %v3435_v28 = vsub.f32 %v288_v11, %v354_v31  ;;  %v3437_v32 = vpack.c.bf16 %v1258_v53, %v1254_v17 }
  0x90   : >> { %4457 = vst [vmem:[#allocation74_spill] sm:$0xff] %v3427_v35  ;;  %v3439_v4 = vsub.f32 %v286_v58, %v1254_v17  ;;  %v3441_v26 = vsub.f32 %v290_v21, %v1258_v53  ;;  %2540 = vmatprep.subr.bf16.mxu1 %v3427_v35  ;;  %v414_v22 = vsub.f32 %v3222_v18, %v4260_v45  ;;  %v4263_v11 = vand.u32 4294901760, %v3226_v20 }
  0x91   : >> { %4458 = vst [vmem:[#allocation75_spill] sm:$0xff] %v3431_v14  ;;  %4459 = vst [vmem:[#allocation76_spill] sm:$0xff] %v3435_v28  ;;  %2350 = vmatpush1.bf16.msra.mxu0 %v3431_v14  ;;  %v426_v49 = vsub.f32 %v3224_v19, %v4259_v9  ;;  %v4268_v47 = vand.u32 4294901760, %v3230_v25  ;;  %2542 = vmatpush1.bf16.msra.mxu1 %v3437_v32  ;;  %v3454_v21 = vand.u32 4294901760, %v226_v24  ;;  %v4275_v58 = vand.u32 4294901760, %v3234_v27 }
  0x92   : >> { %4460 = vst [vmem:[#allocation77_spill] sm:$0xff] %v3437_v32  ;;  %4461 = vst [vmem:[#allocation78_spill] sm:$0xff] %v3439_v4  ;;  %v4276_v39 = vand.u32 4294901760, %v3237_v29  ;;  %v4280_v44 = vand.u32 4294901760, %v3243_v41  ;;  %v415_v31 = vand.u32 4294901760, %v414_v22  ;;  %v1318_v53 = vsub.f32 %v3226_v20, %v4263_v11 }
  0x93   : >> { %4462 = vst [vmem:[#allocation79_spill] sm:$0xff] %v3441_v26  ;;  %4463 = vst [vmem:[#allocation80_spill] sm:$0xff] %v3454_v21  ;;  %v427_v17 = vand.u32 4294901760, %v426_v49  ;;  %v1330_v9 = vsub.f32 %v3230_v25, %v4268_v47  ;;  %v3466_v45 = vsub.f32 %v226_v24, %v3454_v21  ;;  %v420_v32 = vsub.f32 %v3234_v27, %v4275_v58 }
  0x94   : >> { %v432_v22 = vsub.f32 %v3237_v29, %v4276_v39  ;;  %v1324_v49 = vsub.f32 %v3243_v41, %v4280_v44  ;;  %v1319_v14 = vand.u32 4294901760, %v1318_v53  ;;  %v4279_v47 = vand.u32 4294901760, %v3245_v42 }
  0x95   : >> { %4464 = vst [vmem:[#allocation81_spill] sm:$0xff] %v3466_v45  ;;  %v2351_v11 = vpack.c.bf16 %v427_v17, %v415_v31  ;;  %v1331_v35 = vand.u32 4294901760, %v1330_v9  ;;  %v3479_v24 = vand.u32 4294901760, %v3466_v45  ;;  %v421_v21 = vand.u32 4294901760, %v420_v32 }
  0x96   : >> { %v433_v25 = vand.u32 4294901760, %v432_v22  ;;  %v1325_v20 = vand.u32 4294901760, %v1324_v49  ;;  %v1336_v39 = vsub.f32 %v3245_v42, %v4279_v47  ;;  %v4282_v29 = vand.u32 4294901760, %v3247_v43 }
  0x97   : >> { %4465 = vst [vmem:[#allocation82_spill] sm:$0xff] %v3479_v24  ;;  %2352 = vmatprep.subr.bf16.mxu0 %v2351_v11  ;;  %v2543_v58 = vpack.c.bf16 %v1331_v35, %v1319_v14  ;;  %v4281_v31 = vand.u32 4294901760, %v3251_v48  ;;  %v392_v9 = vsub.f32 %v3466_v45, %v3479_v24  ;;  %v4283_v53 = vand.u32 4294901760, %v3255_v50 }
  0x98   : >> { %v2353_v17 = vpack.c.bf16 %v433_v25, %v421_v21  ;;  %v4286_v32 = vand.u32 4294901760, %v3258_v52  ;;  %v1337_v22 = vand.u32 4294901760, %v1336_v39  ;;  %v438_v35 = vsub.f32 %v3247_v43, %v4282_v29 }
  0x99   : >> { %2544 = vmatprep.subr.bf16.mxu1 %v2543_v58  ;;  %v450_v14 = vsub.f32 %v3251_v48, %v4281_v31  ;;  %v4287_v11 = vand.u32 4294901760, %v3260_v54  ;;  %v393_v49 = vand.u32 4294901760, %v392_v9  ;;  %v1342_v25 = vsub.f32 %v3255_v50, %v4283_v53 }
  0x9a   : >> { %v1354_v21 = vsub.f32 %v3258_v52, %v4286_v32  ;;  %v4292_v58 = vand.u32 4294901760, %v3266_v63  ;;  %v2545_v39 = vpack.c.bf16 %v1337_v22, %v1325_v20  ;;  %v439_v47 = vand.u32 4294901760, %v438_v35 }
  0x9b   : >> { %v451_v44 = vand.u32 4294901760, %v450_v14  ;;  %v444_v31 = vsub.f32 %v3260_v54, %v4287_v11  ;;  %394 = vmatmul.mubr.f32.vlgmr.msra.gmra.mrb[0].mxu0 %v393_v49  ;;  %1298 = vmatmul.mubr.f32.vlgmr.msra.gmra.mrb[0].mxu1 %v393_v49  ;;  %v1343_v9 = vand.u32 4294901760, %v1342_v25  ;;  %v4288_v24 = vand.u32 4294901760, %v3268_v0 }
  0x9c   : >> { %v1355_v29 = vand.u32 4294901760, %v1354_v21  ;;  %v456_v53 = vsub.f32 %v3266_v63, %v4292_v58  ;;  %2354 = vmatpush1.bf16.msra.mxu0 %v2353_v17  ;;  %2546 = vmatpush1.bf16.msra.mxu1 %v2545_v39  ;;  %v4289_v22 = vand.u32 4294901760, %v3272_v6  ;;  %v4290_v35 = vand.u32 4294901760, %v3276_v8 }
  0x9d   : >> { %v2355_v32 = vpack.c.bf16 %v451_v44, %v439_v47  ;;  %v445_v20 = vand.u32 4294901760, %v444_v31  ;;  %v1348_v49 = vsub.f32 %v3268_v0, %v4288_v24  ;;  %v4291_v25 = vand.u32 4294901760, %v3279_v13 }
  0x9e   : >> { %v2547_v14 = vpack.c.bf16 %v1355_v29, %v1343_v9  ;;  %v457_v11 = vand.u32 4294901760, %v456_v53  ;;  %v4466_v21 = vmov 0.0   ;;  %v1360_v47 = vsub.f32 %v3272_v6, %v4289_v22 }
  0x9f   : >> { %399 = vmatprep.mubr.f32.mxu0 %v4466_v21  ;;  %1303 = vmatprep.mubr.f32.mxu1 %v4466_v21  ;;  %v462_v29 = vsub.f32 %v3276_v8, %v4290_v35  ;;  %v4293_v44 = vand.u32 4294901760, %v3283_v15  ;;  %v4304_v31 = vand.u32 4294901760, %v3285_v16  ;;  %v1349_v53 = vand.u32 4294901760, %v1348_v49 }
  0xa0   : >> { %2356 = vmatprep.subr.bf16.mxu0 %v2355_v32  ;;  %2548 = vmatprep.subr.bf16.mxu1 %v2547_v14  ;;  %v2357_v17 = vpack.c.bf16 %v457_v11, %v445_v20  ;;  %v474_v39 = vsub.f32 %v3279_v13, %v4291_v25  ;;  %v4296_v32 = vand.u32 4294901760, %v3292_v36  ;;  %v1361_v9 = vand.u32 4294901760, %v1360_v47 }
  0xa1   : >> { %v463_v24 = vand.u32 4294901760, %v462_v29  ;;  %v1366_v22 = vsub.f32 %v3283_v15, %v4293_v44  ;;  %v1378_v35 = vsub.f32 %v3285_v16, %v4304_v31  ;;  %v4297_v20 = vand.u32 4294901760, %v3294_v37 }
  0xa2   : >> { %2358 = vmatpush1.bf16.msra.mxu0 %v2357_v17  ;;  %v475_v14 = vand.u32 4294901760, %v474_v39  ;;  %v468_v11 = vsub.f32 %v3292_v36, %v4296_v32  ;;  %v4301_v49 = vand.u32 4294901760, %v3298_v46  ;;  %v2549_v47 = vpack.c.bf16 %v1361_v9, %v1349_v53 }
  0xa3   : >> { %v1367_v29 = vand.u32 4294901760, %v1366_v22  ;;  %v1379_v25 = vand.u32 4294901760, %v1378_v35  ;;  %v4298_v58 = vand.u32 4294901760, %v3300_v51  ;;  %v480_v17 = vsub.f32 %v3294_v37, %v4297_v20 }
  0xa4   : >> { %v2359_v44 = vpack.c.bf16 %v475_v14, %v463_v24  ;;  %v469_v45 = vand.u32 4294901760, %v468_v11  ;;  %v1372_v39 = vsub.f32 %v3298_v46, %v4301_v49  ;;  %2550 = vmatpush1.bf16.msra.mxu1 %v2549_v47  ;;  %v4299_v22 = vand.u32 4294901760, %v3304_v55 }
  0xa5   : >> { %v2551_v32 = vpack.c.bf16 %v1379_v25, %v1367_v29  ;;  %v1384_v53 = vsub.f32 %v3300_v51, %v4298_v58  ;;  %v4300_v35 = vand.u32 4294901760, %v3308_v59  ;;  %v481_v24 = vand.u32 4294901760, %v480_v17 }
  0xa6   : >> { %2360 = vmatprep.subr.bf16.mxu0 %v2359_v44  ;;  %v1373_v9 = vand.u32 4294901760, %v1372_v39  ;;  %v4302_v14 = vand.u32 4294901760, %v3312_v61  ;;  %v4303_v11 = vand.u32 4294901760, %v3315_v2  ;;  %v486_v25 = vsub.f32 %v3304_v55, %v4299_v22 }
  0xa7   : >> { %2552 = vmatprep.subr.bf16.mxu1 %v2551_v32  ;;  %v1385_v20 = vand.u32 4294901760, %v1384_v53  ;;  %v498_v47 = vsub.f32 %v3308_v59, %v4300_v35  ;;  %v4307_v29 = vand.u32 4294901760, %v3318_v23  ;;  %v2361_v58 = vpack.c.bf16 %v481_v24, %v469_v45 }
  0xa8   : >> { %v1390_v44 = vsub.f32 %v3312_v61, %v4302_v14  ;;  %v1402_v32 = vsub.f32 %v3315_v2, %v4303_v11  ;;  %v4306_v17 = vand.u32 4294901760, %v3322_v38  ;;  %v487_v53 = vand.u32 4294901760, %v486_v25 }
  0xa9   : >> { %v2553_v39 = vpack.c.bf16 %v1385_v20, %v1373_v9  ;;  %v499_v22 = vand.u32 4294901760, %v498_v47  ;;  %v492_v35 = vsub.f32 %v3318_v23, %v4307_v29  ;;  %2362 = vmatpush1.bf16.msra.mxu0 %v2361_v58  ;;  %v4305_v14 = vand.u32 4294901760, %v3326_v33 }
  0xaa   : >> { %v1391_v49 = vand.u32 4294901760, %v1390_v44  ;;  %v1403_v45 = vand.u32 4294901760, %v1402_v32  ;;  %v504_v24 = vsub.f32 %v3322_v38, %v4306_v17  ;;  %v4310_v20 = vand.u32 4294901760, %v3328_v60 }
  0xab   : >> { %2554 = vmatpush1.bf16.msra.mxu1 %v2553_v39  ;;  %v2363_v11 = vpack.c.bf16 %v499_v22, %v487_v53  ;;  %v493_v31 = vand.u32 4294901760, %v492_v35  ;;  %v4311_v9 = vand.u32 4294901760, %v3332_v7  ;;  %v1396_v58 = vsub.f32 %v3326_v33, %v4305_v14  ;;  %v4467_v35 = vld [vmem:[#allocation43_spill] sm:$0xff]  ;;  %v4468_v53 = vld [vmem:[#allocation45_spill] sm:$0xff] }
  0xac   : >> { %v2555_v25 = vpack.c.bf16 %v1403_v45, %v1391_v49  ;;  %v505_v47 = vand.u32 4294901760, %v504_v24  ;;  %v4312_v44 = vand.u32 4294901760, %v3334_v5  ;;  %v1408_v32 = vsub.f32 %v3328_v60, %v4310_v20  ;;  %v4472_v60 = vld [vmem:[#allocation51_spill] sm:$0xff] }
  0xad   : >> { %2364 = vmatprep.subr.bf16.mxu0 %v2363_v11  ;;  %v510_v22 = vsub.f32 %v3332_v7, %v4311_v9  ;;  %v4321_v39 = vand.u32 4294901760, %v4467_v35  ;;  %v4324_v49 = vand.u32 4294901760, %v4468_v53  ;;  %v1397_v24 = vand.u32 4294901760, %v1396_v58  ;;  %v4469_v11 = vld [vmem:[#allocation47_spill] sm:$0xff] }
  0xae   : >> { %2556 = vmatprep.subr.bf16.mxu1 %v2555_v25  ;;  %v2365_v45 = vpack.c.bf16 %v505_v47, %v493_v31  ;;  %v522_v14 = vsub.f32 %v3334_v5, %v4312_v44  ;;  %v4323_v17 = vand.u32 4294901760, %v4469_v11  ;;  %v1409_v29 = vand.u32 4294901760, %v1408_v32  ;;  %v4470_v47 = vld [vmem:[#allocation48_spill] sm:$0xff]  ;;  %v4471_v44 = vld [vmem:[#allocation50_spill] sm:$0xff] }
  0xaf   : >> { %v511_v33 = vand.u32 4294901760, %v510_v22  ;;  %v1414_v20 = vsub.f32 %v4467_v35, %v4321_v39  ;;  %v1426_v9 = vsub.f32 %v4468_v53, %v4324_v49  ;;  %v4326_v58 = vand.u32 4294901760, %v4470_v47 }
  0xb0   : >> { %2366 = vmatpush1.bf16.msra.mxu0 %v2365_v45  ;;  %v523_v25 = vand.u32 4294901760, %v522_v14  ;;  %v516_v31 = vsub.f32 %v4469_v11, %v4323_v17  ;;  %v4329_v5 = vand.u32 4294901760, %v4471_v44  ;;  %v2557_v32 = vpack.c.bf16 %v1409_v29, %v1397_v24  ;;  %v4474_v24 = vld [vmem:[#allocation54_spill] sm:$0xff] }
  0xb1   : >> { %v1415_v22 = vand.u32 4294901760, %v1414_v20  ;;  %v1427_v7 = vand.u32 4294901760, %v1426_v9  ;;  %v4328_v38 = vand.u32 4294901760, %v4472_v60  ;;  %v528_v45 = vsub.f32 %v4470_v47, %v4326_v58  ;;  %v4473_v20 = vld [vmem:[#allocation53_spill] sm:$0xff] }
  0xb2   : >> { %v2367_v39 = vpack.c.bf16 %v523_v25, %v511_v33  ;;  %v517_v35 = vand.u32 4294901760, %v516_v31  ;;  %v1420_v14 = vsub.f32 %v4471_v44, %v4329_v5  ;;  %2558 = vmatpush1.bf16.msra.mxu1 %v2557_v32  ;;  %v4331_v9 = vand.u32 4294901760, %v4473_v20  ;;  %v4475_v31 = vld [vmem:[#allocation55_spill] sm:$0xff] }
  0xb3   : >> { %v2559_v17 = vpack.c.bf16 %v1427_v7, %v1415_v22  ;;  %v1432_v29 = vsub.f32 %v4472_v60, %v4328_v38  ;;  %v4332_v49 = vand.u32 4294901760, %v4474_v24  ;;  %v529_v33 = vand.u32 4294901760, %v528_v45  ;;  %v4476_v22 = vld [vmem:[#allocation59_spill] sm:$0xff]  ;;  %v4477_v45 = vld [vmem:[#allocation60_spill] sm:$0xff] }
  0xb4   : >> { %2368 = vmatprep.subr.bf16.mxu0 %v2367_v39  ;;  %v1421_v25 = vand.u32 4294901760, %v1420_v14  ;;  %v4334_v11 = vand.u32 4294901760, %v4475_v31  ;;  %v4336_v58 = vand.u32 4294901760, %v3371_v62  ;;  %v534_v7 = vsub.f32 %v4473_v20, %v4331_v9  ;;  %v4479_v20 = vld [vmem:[#allocation63_spill] sm:$0xff] }
  0xb5   : >> { %2560 = vmatprep.subr.bf16.mxu1 %v2559_v17  ;;  %v1433_v47 = vand.u32 4294901760, %v1432_v29  ;;  %v546_v32 = vsub.f32 %v4474_v24, %v4332_v49  ;;  %v4343_v38 = vand.u32 4294901760, %v4476_v22  ;;  %v2369_v5 = vpack.c.bf16 %v529_v33, %v517_v35 }
  0xb6   : >> { %v1438_v39 = vsub.f32 %v4475_v31, %v4334_v11  ;;  %v1450_v17 = vsub.f32 %v3371_v62, %v4336_v58  ;;  %v4341_v14 = vand.u32 4294901760, %v4477_v45  ;;  %v535_v60 = vand.u32 4294901760, %v534_v7  ;;  %v4478_v11 = vld [vmem:[#allocation62_spill] sm:$0xff] }
  0xb7   : >> { %v2561_v29 = vpack.c.bf16 %v1433_v47, %v1421_v25  ;;  %v547_v9 = vand.u32 4294901760, %v546_v32  ;;  %v540_v49 = vsub.f32 %v4476_v22, %v4343_v38  ;;  %2370 = vmatpush1.bf16.msra.mxu0 %v2369_v5  ;;  %v4342_v31 = vand.u32 4294901760, %v4478_v11  ;;  %v4480_v25 = vld [vmem:[#allocation65_spill] sm:$0xff] }
  0xb8   : >> { %v1439_v24 = vand.u32 4294901760, %v1438_v39  ;;  %v1451_v35 = vand.u32 4294901760, %v1450_v17  ;;  %v552_v33 = vsub.f32 %v4477_v45, %v4341_v14  ;;  %v4344_v47 = vand.u32 4294901760, %v4479_v20  ;;  %v4481_v39 = vld [vmem:[#allocation66_spill] sm:$0xff] }
  0xb9   : >> { %2562 = vmatpush1.bf16.msra.mxu1 %v2561_v29  ;;  %v2371_v58 = vpack.c.bf16 %v547_v9, %v535_v60  ;;  %v541_v62 = vand.u32 4294901760, %v540_v49  ;;  %v4345_v7 = vand.u32 4294901760, %v4480_v25  ;;  %v1444_v5 = vsub.f32 %v4478_v11, %v4342_v31  ;;  %v4482_v49 = vld [vmem:[#allocation67_spill] sm:$0xff] }
  0xba   : >> { %v2563_v32 = vpack.c.bf16 %v1451_v35, %v1439_v24  ;;  %v553_v44 = vand.u32 4294901760, %v552_v33  ;;  %v4346_v17 = vand.u32 4294901760, %v4481_v39  ;;  %v1456_v14 = vsub.f32 %v4479_v20, %v4344_v47 }
  0xbb   : >> { %2372 = vmatprep.subr.bf16.mxu0 %v2371_v58  ;;  %v558_v60 = vsub.f32 %v4480_v25, %v4345_v7  ;;  %v4348_v9 = vand.u32 4294901760, %v4482_v49  ;;  %v4351_v24 = vand.u32 4294901760, %v3399_v1  ;;  %v1445_v35 = vand.u32 4294901760, %v1444_v5 }
  0xbc   : >> { %2564 = vmatprep.subr.bf16.mxu1 %v2563_v32  ;;  %v2373_v29 = vpack.c.bf16 %v553_v44, %v541_v62  ;;  %v570_v33 = vsub.f32 %v4481_v39, %v4346_v17  ;;  %v4350_v58 = vand.u32 4294901760, %v3403_v30  ;;  %v1457_v31 = vand.u32 4294901760, %v1456_v14 }
  0xbd   : >> { %v559_v38 = vand.u32 4294901760, %v558_v60  ;;  %v1462_v47 = vsub.f32 %v4482_v49, %v4348_v9  ;;  %v1474_v7 = vsub.f32 %v3399_v1, %v4351_v24  ;;  %v4352_v44 = vand.u32 4294901760, %v3405_v40 }
  0xbe   : >> { %2374 = vmatpush1.bf16.msra.mxu0 %v2373_v29  ;;  %v571_v32 = vand.u32 4294901760, %v570_v33  ;;  %v564_v62 = vsub.f32 %v3403_v30, %v4350_v58  ;;  %v4353_v5 = vand.u32 4294901760, %v3409_v56  ;;  %v2565_v14 = vpack.c.bf16 %v1457_v31, %v1445_v35  ;;  %v227_v58 = vld [vmem:[#allocation2 + $0x8] sm:$0xff] }
  0xbf   : >> { %v1463_v60 = vand.u32 4294901760, %v1462_v47  ;;  %v1475_v17 = vand.u32 4294901760, %v1474_v7  ;;  %v4354_v39 = vand.u32 4294901760, %v3411_v3  ;;  %v576_v29 = vsub.f32 %v3405_v40, %v4352_v44  ;;  %v4483_v7 = vld [vmem:[#allocation73_spill] sm:$0xff] }
  0xc0   : >> { %v2375_v9 = vpack.c.bf16 %v571_v32, %v559_v38  ;;  %v565_v49 = vand.u32 4294901760, %v564_v62  ;;  %v1468_v33 = vsub.f32 %v3409_v56, %v4353_v5  ;;  %2566 = vmatpush1.bf16.msra.mxu1 %v2565_v14  ;;  %v4355_v47 = vand.u32 4294901760, %v3417_v34 }
  0xc1   : >> { %v2567_v24 = vpack.c.bf16 %v1475_v17, %v1463_v60  ;;  %v1480_v31 = vsub.f32 %v3411_v3, %v4354_v39  ;;  %v4358_v38 = vand.u32 4294901760, %v4483_v7  ;;  %v577_v35 = vand.u32 4294901760, %v576_v29 }
  0xc2   : >> { %2376 = vmatprep.subr.bf16.mxu0 %v2375_v9  ;;  %v1469_v32 = vand.u32 4294901760, %v1468_v33  ;;  %v4360_v62 = vand.u32 4294901760, %v3423_v12  ;;  %v4361_v44 = vand.u32 4294901760, %v3429_v57  ;;  %v582_v17 = vsub.f32 %v3417_v34, %v4355_v47 }
  0xc3   : >> { %2568 = vmatprep.subr.bf16.mxu1 %v2567_v24  ;;  %v1481_v5 = vand.u32 4294901760, %v1480_v31  ;;  %v594_v14 = vsub.f32 %v4483_v7, %v4358_v38  ;;  %v3690_v60 = vand.u32 4294901760, %v227_v58  ;;  %v2377_v39 = vpack.c.bf16 %v577_v35, %v565_v49 }
  0xc4   : >> { %v1486_v9 = vsub.f32 %v3423_v12, %v4360_v62  ;;  %v1498_v24 = vsub.f32 %v3429_v57, %v4361_v44  ;;  %v4363_v29 = vand.u32 4294901760, %v3433_v10  ;;  %v583_v31 = vand.u32 4294901760, %v582_v17 }
  0xc5   : >> { %4484 = vst [vmem:[#allocation45_spill] sm:$0xff] %v3690_v60  ;;  %v2569_v33 = vpack.c.bf16 %v1481_v5, %v1469_v32  ;;  %v595_v47 = vand.u32 4294901760, %v594_v14  ;;  %v3700_v34 = vsub.f32 %v227_v58, %v3690_v60  ;;  %2378 = vmatpush1.bf16.msra.mxu0 %v2377_v39  ;;  %v4362_v35 = vand.u32 4294901760, %v3435_v28 }
  0xc6   : >> { %v1487_v38 = vand.u32 4294901760, %v1486_v9  ;;  %v1499_v7 = vand.u32 4294901760, %v1498_v24  ;;  %v588_v49 = vsub.f32 %v3433_v10, %v4363_v29  ;;  %v4367_v5 = vand.u32 4294901760, %v3439_v4 }
  0xc7   : >> { %4485 = vst [vmem:[#allocation59_spill] sm:$0xff] %v3700_v34  ;;  %2570 = vmatpush1.bf16.msra.mxu1 %v2569_v33  ;;  %v2379_v62 = vpack.c.bf16 %v595_v47, %v583_v31  ;;  %v3707_v44 = vand.u32 4294901760, %v3700_v34  ;;  %v4366_v32 = vand.u32 4294901760, %v3441_v26  ;;  %v600_v39 = vsub.f32 %v3435_v28, %v4362_v35  ;;  %v4488_v35 = vld [vmem:[#allocation18_spill] sm:$0xff] }
  0xc8   : >> { %v2571_v58 = vpack.c.bf16 %v1499_v7, %v1487_v38  ;;  %v589_v17 = vand.u32 4294901760, %v588_v49  ;;  %v1492_v47 = vsub.f32 %v3439_v4, %v4367_v5  ;;  %v2383_v31 = vpack.c.bf16 %v3224_v19, %v3222_v18  ;;  %v4487_v49 = vld [vmem:[#allocation16_spill] sm:$0xff] }
  0xc9   : >> { %4486 = vst [vmem:[#allocation60_spill] sm:$0xff] %v3707_v44  ;;  %2380 = vmatprep.subr.bf16.mxu0 %v2379_v62  ;;  %v403_v14 = vsub.f32 %v3700_v34, %v3707_v44  ;;  %v1504_v9 = vsub.f32 %v3441_v26, %v4366_v32  ;;  %v601_v24 = vand.u32 4294901760, %v600_v39  ;;  %v2575_v29 = vpack.c.bf16 %v4488_v35, %v4487_v49  ;;  %v4489_v32 = vld [vmem:[#allocation21_spill] sm:$0xff] }
  0xca   : >> { %2572 = vmatprep.subr.bf16.mxu1 %v2571_v58  ;;  %v1493_v38 = vand.u32 4294901760, %v1492_v47  ;;  %v2385_v58 = vpack.c.bf16 %v4489_v32, %v3234_v27  ;;  %v2577_v39 = vpack.c.bf16 %v3245_v42, %v3243_v41  ;;  %v4490_v47 = vld [vmem:[#allocation80_spill] sm:$0xff]  ;;  %v4495_v42 = vld [vmem:[#allocation42_spill] sm:$0xff]  ;;  %v4496_v32 = vld [vmem:[#allocation43_spill] sm:$0xff]  ;;  %v4497_v27 = vand.u32 4294901760, %v3247_v43 }
  0xcb   : >> { %v404_v7 = vand.u32 4294901760, %v403_v14  ;;  %v1505_v33 = vand.u32 4294901760, %v1504_v9  ;;  %v2381_v62 = vpack.c.bf16 %v601_v24, %v589_v17  ;;  %v2387_v17 = vpack.c.bf16 %v3251_v48, %v3247_v43 }
  0xcc   : >> { %v2579_v14 = vpack.c.bf16 %v3258_v52, %v3255_v50  ;;  %v2581_v9 = vpack.c.bf16 %v3272_v6, %v3268_v0  ;;  %v2391_v24 = vpack.c.bf16 %v3279_v13, %v3276_v8  ;;  %v4498_v35 = vand.u32 4294901760, %v3251_v48 }
  0xcd   : >> { %405 = vmatmul.mubr.f32.gmra.mrb[2].mxu0 %v404_v7  ;;  %1309 = vmatmul.mubr.f32.gmra.mrb[2].mxu1 %v404_v7  ;;  %v2573_v44 = vpack.c.bf16 %v1505_v33, %v1493_v38  ;;  %v2393_v7 = vpack.c.bf16 %v3294_v37, %v3292_v36  ;;  %v2585_v38 = vpack.c.bf16 %v3300_v51, %v3298_v46  ;;  %v4499_v19 = vand.u32 4294901760, %v3255_v50 }
  0xce   : >> { %2382 = vmatpush1.bf16.msra.mxu0 %v2381_v62  ;;  %635 = vmatprep.mubr.f32.mxu0 %v4466_v21  ;;  %v2395_v33 = vpack.c.bf16 %v3308_v59, %v3304_v55  ;;  %v4491_v62 = vld [vmem:[#allocation36_spill] sm:$0xff]  ;;  %v3770_v49 = vpack.c.bf16 %v4498_v35, %v4497_v27  ;;  %v4500_v18 = vand.u32 4294901760, %v3258_v52  ;;  %v4501_v26 = vand.u32 4294901760, %v3260_v54 }
  0xcf   : >> { %2574 = vmatpush1.bf16.msra.mxu1 %v2573_v44  ;;  %2384 = vmatprep.subr.bf16.mxu0 %v2383_v31  ;;  %v2389_v44 = vpack.c.bf16 %v3266_v63, %v3260_v54  ;;  %v2587_v31 = vpack.c.bf16 %v3315_v2, %v3312_v61  ;;  %v4502_v4 = vand.u32 4294901760, %v3266_v63  ;;  %v4503_v43 = vand.u32 4294901760, %v3268_v0 }
  0xd0   : >> { %1539 = vmatprep.mubr.f32.mxu1 %v4466_v21  ;;  %2576 = vmatprep.subr.bf16.mxu1 %v2575_v29  ;;  %v2583_v29 = vpack.c.bf16 %v3285_v16, %v3283_v15  ;;  %v3776_v34 = vpack.c.bf16 %v4500_v18, %v4499_v19  ;;  %v4504_v48 = vand.u32 4294901760, %v3272_v6  ;;  %v4505_v50 = vand.u32 4294901760, %v3276_v8 }
  0xd1   : >> { %637 = vmatmul.mubr.f32.vlgmr.msra.gmra.mrb[0].mxu0 %v4490_v47  ;;  %v3782_v28 = vpack.c.bf16 %v4502_v4, %v4501_v26  ;;  %v4506_v52 = vand.u32 4294901760, %v3279_v13  ;;  %v4507_v19 = vand.u32 4294901760, %v3283_v15  ;;  %v4508_v54 = vand.u32 4294901760, %v3285_v16 }
  0xd2   : >> { %2386 = vmatpush1.bf16.msra.mxu0 %v2385_v58  ;;  %1541 = vmatmul.mubr.f32.vlgmr.msra.gmra.mrb[0].mxu1 %v4490_v47  ;;  %v2397_v58 = vpack.c.bf16 %v4491_v62, %v3318_v23  ;;  %v4494_v47 = vld [vmem:[#allocation41_spill] sm:$0xff]  ;;  %v3788_v27 = vpack.c.bf16 %v4504_v48, %v4503_v43  ;;  %v4509_v0 = vand.u32 4294901760, %v3292_v36  ;;  %v4510_v6 = vand.u32 4294901760, %v3294_v37  ;;  %v4525_v48 = vld [vmem:[#allocation47_spill] sm:$0xff] }
  0xd3   : >> { %2578 = vmatpush1.bf16.msra.mxu1 %v2577_v39  ;;  %2388 = vmatprep.subr.bf16.mxu0 %v2387_v17  ;;  %v4492_v39 = vld [vmem:[#allocation38_spill] sm:$0xff]  ;;  %v4493_v17 = vld [vmem:[#allocation39_spill] sm:$0xff]  ;;  %v2399_v41 = vpack.c.bf16 %v4495_v42, %v4494_v47  ;;  %v3794_v18 = vpack.c.bf16 %v4506_v52, %v4505_v50  ;;  %v3800_v63 = vpack.c.bf16 %v4508_v54, %v4507_v19  ;;  %v4511_v8 = vand.u32 4294901760, %v3298_v46 }
  0xd4   : >> { %2580 = vmatprep.subr.bf16.mxu1 %v2579_v14  ;;  %642 = vmatprep.mubr.f32.mxu0 %v4466_v21  ;;  %v2589_v5 = vpack.c.bf16 %v4493_v17, %v4492_v39  ;;  %v2591_v14 = vpack.c.bf16 %v4468_v53, %v4496_v32  ;;  %v3807_v26 = vpack.c.bf16 %v4510_v6, %v4509_v0  ;;  %v4512_v13 = vand.u32 4294901760, %v3300_v51  ;;  %v4529_v19 = vld [vmem:[#allocation50_spill] sm:$0xff]  ;;  %v4533_v6 = vld [vmem:[#allocation53_spill] sm:$0xff] }
  0xd5   : >> { %1546 = vmatprep.mubr.f32.mxu1 %v4466_v21  ;;  %644 = vmatmul.mubr.f32.gmra.mrb[2].mxu0 %v3690_v60  ;;  %v4513_v15 = vand.u32 4294901760, %v3304_v55  ;;  %v4514_v16 = vand.u32 4294901760, %v3308_v59  ;;  %v4515_v36 = vand.u32 4294901760, %v3312_v61  ;;  %v4516_v37 = vand.u32 4294901760, %v3315_v2 }
  0xd6   : >> { %2390 = vmatpush1.bf16.msra.mxu0 %v2389_v44  ;;  %1548 = vmatmul.mubr.f32.gmra.mrb[2].mxu1 %v3690_v60  ;;  %v3813_v4 = vpack.c.bf16 %v4512_v13, %v4511_v8  ;;  %v4517_v46 = vand.u32 4294901760, %v3318_v23  ;;  %v4518_v51 = vand.u32 4294901760, %v4491_v62  ;;  %v4519_v55 = vand.u32 4294901760, %v4492_v39  ;;  %v4527_v39 = vld [vmem:[#allocation48_spill] sm:$0xff]  ;;  %v4535_v8 = vld [vmem:[#allocation54_spill] sm:$0xff] }
  0xd7   : >> { %2582 = vmatpush1.bf16.msra.mxu1 %v2581_v9  ;;  %2392 = vmatprep.subr.bf16.mxu0 %v2391_v24  ;;  %v3819_v35 = vpack.c.bf16 %v4514_v16, %v4513_v15  ;;  %v3826_v44 = vpack.c.bf16 %v4516_v37, %v4515_v36  ;;  %v4520_v59 = vand.u32 4294901760, %v4493_v17  ;;  %v4522_v61 = vand.u32 4294901760, %v4495_v42  ;;  %v4539_v16 = vld [vmem:[#allocation57_spill] sm:$0xff] }
  0xd8   : >> { %2584 = vmatprep.subr.bf16.mxu1 %v2583_v29  ;;  %778 = vmatprep.mubr.f32.mxu0 %v4466_v21  ;;  %v3832_v9 = vpack.c.bf16 %v4518_v51, %v4517_v46  ;;  %v4521_v29 = vand.u32 4294901760, %v4494_v47  ;;  %v4523_v2 = vand.u32 4294901760, %v4496_v32  ;;  %v4524_v23 = vand.u32 4294901760, %v4468_v53  ;;  %v4531_v47 = vld [vmem:[#allocation51_spill] sm:$0xff] }
  0xd9   : >> { %1682 = vmatprep.mubr.f32.mxu1 %v4466_v21  ;;  %v3838_v24 = vpack.c.bf16 %v4520_v59, %v4519_v55  ;;  %v4526_v50 = vand.u32 4294901760, %v4525_v48  ;;  %v4528_v52 = vand.u32 4294901760, %v4527_v39  ;;  %v4530_v54 = vand.u32 4294901760, %v4529_v19  ;;  %v4537_v53 = vld [vmem:[#allocation55_spill] sm:$0xff] }
  0xda   : >> { %v3844_v43 = vpack.c.bf16 %v4522_v61, %v4521_v29  ;;  %2394 = vmatpush1.bf16.msra.mxu0 %v2393_v7  ;;  %v3850_v62 = vpack.c.bf16 %v4524_v23, %v4523_v2  ;;  %v4532_v0 = vand.u32 4294901760, %v4531_v47  ;;  %v4534_v7 = vand.u32 4294901760, %v4533_v6 }
  0xdb   : >> { %v3856_v17 = vpack.c.bf16 %v4528_v52, %v4526_v50  ;;  %v4536_v32 = vand.u32 4294901760, %v4535_v8  ;;  %2586 = vmatpush1.bf16.msra.mxu1 %v2585_v38  ;;  %2396 = vmatprep.subr.bf16.mxu0 %v2395_v33  ;;  %v4538_v15 = vand.u32 4294901760, %v4537_v53  ;;  %v4540_v36 = vand.u32 4294901760, %v4539_v16  ;;  %v4547_v33 = vld [vmem:[#allocation66_spill] sm:$0xff]  ;;  %v4550_v50 = vld [vmem:[#allocation67_spill] sm:$0xff] }
  0xdc   : >> { %v3862_v42 = vpack.c.bf16 %v4532_v0, %v4530_v54  ;;  %v4541_v46 = vand.u32 4294901760, %v4476_v22  ;;  %v4542_v51 = vand.u32 4294901760, %v4477_v45  ;;  %v4543_v59 = vand.u32 4294901760, %v4478_v11  ;;  %2588 = vmatprep.subr.bf16.mxu1 %v2587_v31 }
  0xdd   : >> { %v3868_v13 = vpack.c.bf16 %v4536_v32, %v4534_v7  ;;  %v3874_v37 = vpack.c.bf16 %v4540_v36, %v4538_v15  ;;  %v4544_v29 = vand.u32 4294901760, %v4479_v20  ;;  %v4546_v38 = vand.u32 4294901760, %v4480_v25 }
  0xde   : >> { %v3880_v55 = vpack.c.bf16 %v4542_v51, %v4541_v46  ;;  %v4548_v2 = vand.u32 4294901760, %v4547_v33  ;;  %v4551_v52 = vand.u32 4294901760, %v4550_v50  ;;  %v4552_v54 = vand.u32 4294901760, %v3399_v1  ;;  %v4560_v51 = vld [vmem:[#allocation72_spill] sm:$0xff]  ;;  %2398 = vmatpush1.bf16.msra.mxu0 %v2397_v58 }
  0xdf   : >> { %v3886_v61 = vpack.c.bf16 %v4544_v29, %v4543_v59  ;;  %v4554_v7 = vand.u32 4294901760, %v3403_v30  ;;  %v4555_v32 = vand.u32 4294901760, %v3405_v40  ;;  %v4557_v31 = vand.u32 4294901760, %v3409_v56  ;;  %v4562_v29 = vld [vmem:[#allocation73_spill] sm:$0xff]  ;;  %2590 = vmatpush1.bf16.msra.mxu1 %v2589_v5  ;;  %2400 = vmatprep.subr.bf16.mxu0 %v2399_v41 }
  0xe0   : >> { %v3892_v23 = vpack.c.bf16 %v4548_v2, %v4546_v38  ;;  %v3898_v0 = vpack.c.bf16 %v4552_v54, %v4551_v52  ;;  %v4558_v36 = vand.u32 4294901760, %v3411_v3  ;;  %v4561_v59 = vand.u32 4294901760, %v4560_v51  ;;  %2592 = vmatprep.subr.bf16.mxu1 %v2591_v14 }
  0xe1   : >> { %4545 = vst [vmem:[#allocation62_spill] sm:$0xff] %v3886_v61  ;;  %v3904_v15 = vpack.c.bf16 %v4555_v32, %v4554_v7  ;;  %v4563_v38 = vand.u32 4294901760, %v4562_v29  ;;  %v4564_v52 = vand.u32 4294901760, %v3423_v12  ;;  %v4565_v54 = vand.u32 4294901760, %v3429_v57  ;;  %v4567_v32 = vld [vmem:[#allocation76_spill] sm:$0xff] }
  0xe2   : >> { %4549 = vst [vmem:[#allocation63_spill] sm:$0xff] %v3892_v23  ;;  %4553 = vst [vmem:[#allocation65_spill] sm:$0xff] %v3898_v0  ;;  %v3910_v46 = vpack.c.bf16 %v4558_v36, %v4557_v31  ;;  %v4566_v7 = vand.u32 4294901760, %v3433_v10  ;;  %v4569_v31 = vld [vmem:[#allocation78_spill] sm:$0xff]  ;;  %v2597_v5 = vpack.c.bf16 %v4479_v20, %v4478_v11  ;;  %v2407_v41 = vpack.c.bf16 %v4547_v33, %v4480_v25  ;;  %v4576_v20 = vld [vmem:[#allocation19_spill] sm:$0xff] }
  0xe3   : >> { %4556 = vst [vmem:[#allocation36_spill] sm:$0xff] %v3904_v15  ;;  %v3916_v2 = vpack.c.bf16 %v4563_v38, %v4561_v59  ;;  %v3922_v60 = vpack.c.bf16 %v4565_v54, %v4564_v52  ;;  %v4568_v15 = vand.u32 4294901760, %v4567_v32  ;;  %v4570_v36 = vand.u32 4294901760, %v4569_v31  ;;  %v4580_v25 = vld [vmem:[#allocation59_spill] sm:$0xff]  ;;  %v4594_v54 = vld [vmem:[#allocation49_spill] sm:$0xff] }
  0xe4   : >> { %4559 = vst [vmem:[#allocation38_spill] sm:$0xff] %v3910_v46  ;;  %v4571_v46 = vld [vmem:[#allocation79_spill] sm:$0xff]  ;;  %v2401_v59 = vpack.c.bf16 %v4527_v39, %v4525_v48  ;;  %v2593_v38 = vpack.c.bf16 %v4531_v47, %v4529_v19  ;;  %v2403_v52 = vpack.c.bf16 %v4535_v8, %v4533_v6  ;;  %v2599_v58 = vpack.c.bf16 %v3399_v1, %v4550_v50  ;;  %v4582_v39 = vld [vmem:[#allocation28_spill] sm:$0xff]  ;;  %v4583_v19 = vld [vmem:[#allocation29_spill] sm:$0xff] }
  0xe5   : >> { %v3928_v0 = vpack.c.bf16 %v4568_v15, %v4566_v7  ;;  %v4572_v23 = vand.u32 4294901760, %v4571_v46  ;;  %v2595_v15 = vpack.c.bf16 %v4539_v16, %v4537_v53  ;;  %v2409_v14 = vpack.c.bf16 %v3405_v40, %v3403_v30  ;;  %v4575_v30 = vld [vmem:[#allocation81_spill] sm:$0xff]  ;;  %v4581_v48 = vld [vmem:[#allocation27_spill] sm:$0xff]  ;;  %v4584_v47 = vld [vmem:[#allocation30_spill] sm:$0xff] }
  0xe6   : >> { %2402 = vmatpush1.bf16.msra.mxu0 %v2401_v59  ;;  %2594 = vmatpush1.bf16.msra.mxu1 %v2593_v38  ;;  %v2603_v11 = vpack.c.bf16 %v3429_v57, %v3423_v12  ;;  %v2413_v1 = vpack.c.bf16 %v4567_v32, %v3433_v10  ;;  %v2605_v40 = vpack.c.bf16 %v4571_v46, %v4569_v31  ;;  %v4577_v12 = vld [vmem:[#allocation22_spill] sm:$0xff]  ;;  %v4578_v57 = vld [vmem:[#allocation25_spill] sm:$0xff]  ;;  %v4585_v6 = vld [vmem:[#allocation31_spill] sm:$0xff] }
  0xe7   : >> { %v3934_v61 = vpack.c.bf16 %v4572_v23, %v4570_v36  ;;  %v2405_v23 = vpack.c.bf16 %v4477_v45, %v4476_v22  ;;  %2404 = vmatprep.subr.bf16.mxu0 %v2403_v52  ;;  %2596 = vmatprep.subr.bf16.mxu1 %v2595_v15  ;;  %v2601_v22 = vpack.c.bf16 %v3411_v3, %v3409_v56  ;;  %v4573_v56 = vld [vmem:[#allocation13_spill] sm:$0xff]  ;;  %v4579_v10 = vld [vmem:[#allocation26_spill] sm:$0xff]  ;;  %v4586_v8 = vld [vmem:[#allocation32_spill] sm:$0xff] }
  0xe8   : >> { %v2411_v45 = vpack.c.bf16 %v4562_v29, %v4560_v51  ;;  %v4574_v3 = vld [vmem:[#allocation17_spill] sm:$0xff]  ;;  %v4588_v16 = vld [vmem:[#allocation34_spill] sm:$0xff]  ;;  %v4589_v33 = vld [vmem:[#allocation35_spill] sm:$0xff] }
  0xe9   : >> { %v4587_v53 = vld [vmem:[#allocation33_spill] sm:$0xff]  ;;  %v4591_v46 = vld [vmem:[#allocation40_spill] sm:$0xff]  ;;  %v4593_v29 = vld [vmem:[#allocation46_spill] sm:$0xff] }
  0xea   : >> { %2406 = vmatpush1.bf16.msra.mxu0 %v2405_v23  ;;  %2598 = vmatpush1.bf16.msra.mxu1 %v2597_v5  ;;  %v4590_v50 = vld [vmem:[#allocation37_spill] sm:$0xff]  ;;  %v4592_v51 = vld [vmem:[#allocation44_spill] sm:$0xff]  ;;  %v4597_v31 = vld [vmem:[#allocation58_spill] sm:$0xff] }
  0xeb   : >> { %2408 = vmatprep.subr.bf16.mxu0 %v2407_v41  ;;  %2600 = vmatprep.subr.bf16.mxu1 %v2599_v58  ;;  %v4595_v7 = vld [vmem:[#allocation52_spill] sm:$0xff]  ;;  %v4598_v36 = vld [vmem:[#allocation61_spill] sm:$0xff]  ;;  %v4602_v15 = vld [vmem:[#allocation70_spill] sm:$0xff] }
  0xec   : >> { %v4596_v32 = vld [vmem:[#allocation56_spill] sm:$0xff]  ;;  %v4601_v52 = vld [vmem:[#allocation69_spill] sm:$0xff]  ;;  %v4603_v23 = vld [vmem:[#allocation71_spill] sm:$0xff] }
  0xed   : >> { %v4599_v59 = vld [vmem:[#allocation64_spill] sm:$0xff]  ;;  %v4604_v5 = vld [vmem:[#allocation14_spill] sm:$0xff]  ;;  %v4606_v58 = vld [vmem:[#allocation15_spill] sm:$0xff] }
  0xee   : >> { %2410 = vmatpush1.bf16.msra.mxu0 %v2409_v14  ;;  %2602 = vmatpush1.bf16.msra.mxu1 %v2601_v22  ;;  %v4600_v38 = vld [vmem:[#allocation68_spill] sm:$0xff]  ;;  %v4605_v41 = vand.u32 4294901760, %v4604_v5  ;;  %v4607_v14 = vand.u32 4294901760, %v4606_v58  ;;  %v4619_v5 = vld [vmem:[#allocation23_spill] sm:$0xff] }
  0xef   : >> { %2412 = vmatprep.subr.bf16.mxu0 %v2411_v45  ;;  %2604 = vmatprep.subr.bf16.mxu1 %v2603_v11  ;;  %v4608_v45 = vld [vmem:[#allocation74_spill] sm:$0xff]  ;;  %v4609_v11 = vld [vmem:[#allocation16_spill] sm:$0xff]  ;;  %v4620_v58 = vand.u32 4294901760, %v4619_v5 }
  0xf0   : >> { %v2447_v22 = vpack.c.bf16 %v4607_v14, %v4605_v41  ;;  %v4621_v41 = vld [vmem:[#allocation24_spill] sm:$0xff] }
  0xf1   : >> { %v4622_v14 = vand.u32 4294901760, %v4621_v41 }
  0xf2   : >> { %2414 = vmatpush1.bf16.msra.mxu0 %v2413_v1  ;;  %2606 = vmatpush1.bf16.msra.mxu1 %v2605_v40  ;;  %v4610_v1 = vand.u32 4294901760, %v4609_v11  ;;  %v4611_v40 = vld [vmem:[#allocation18_spill] sm:$0xff] }
  0xf3   : >> { %2416 = vmatprep.subr.bf16.mxu0 %v4573_v56  ;;  %2608 = vmatprep.subr.bf16.mxu1 %v4574_v3  ;;  %v4623_v11 = vld [vmem:[#allocation82_spill] sm:$0xff] }
  0xf5   : >> { %781 = vmatmul.mubr.f32.vlgmr.msra.gmra.mrb[0].mxu0 %v4575_v30  ;;  %1685 = vmatmul.mubr.f32.vlgmr.msra.gmra.mrb[0].mxu1 %v4575_v30  ;;  %v4612_v30 = vand.u32 4294901760, %v4611_v40  ;;  %v2146_v40 = vld [vmem:[#allocation3] sm:$0xff] }
  0xf6   : >> { %2418 = vmatpush1.bf16.msra.mxu0 %v4576_v20  ;;  %2610 = vmatpush1.bf16.msra.mxu1 %v4577_v12 }
  0xf7   : >> { %2420 = vmatprep.subr.bf16.mxu0 %v4578_v57  ;;  %2612 = vmatprep.subr.bf16.mxu1 %v4579_v10 }
  0xf8   : >> { %786 = vmatprep.mubr.f32.mxu0 %v4466_v21  ;;  %1690 = vmatprep.mubr.f32.mxu1 %v4466_v21 }
  0xf9   : >> { %789 = vmatmul.mubr.f32.gmra.mrb[2].mxu0 %v4580_v25  ;;  %1693 = vmatmul.mubr.f32.gmra.mrb[2].mxu1 %v4580_v25  ;;  %v2639_v25 = vpack.c.bf16 %v4612_v30, %v4610_v1 }
  0xfa   : >> { %2422 = vmatpush1.bf16.msra.mxu0 %v4581_v48  ;;  %2614 = vmatpush1.bf16.msra.mxu1 %v4582_v39 }
  0xfb   : >> { %2424 = vmatprep.subr.bf16.mxu0 %v4583_v19  ;;  %2616 = vmatprep.subr.bf16.mxu1 %v4584_v47 }
  0xfc   : >> { %891 = vmatprep.mubr.f32.mxu0 %v4466_v21  ;;  %1795 = vmatprep.mubr.f32.mxu1 %v4466_v21 }
  0xfe   : >> { %2426 = vmatpush1.bf16.msra.mxu0 %v4585_v6  ;;  %2618 = vmatpush1.bf16.msra.mxu1 %v4586_v8 }
  0xff   : >> { %2428 = vmatprep.subr.bf16.mxu0 %v4587_v53  ;;  %2620 = vmatprep.subr.bf16.mxu1 %v4588_v16 }
 0x102   : >> { %2430 = vmatpush1.bf16.msra.mxu0 %v4589_v33  ;;  %2622 = vmatpush1.bf16.msra.mxu1 %v4590_v50 }
 0x103   : >> { %2432 = vmatprep.subr.bf16.mxu0 %v4591_v46  ;;  %2624 = vmatprep.subr.bf16.mxu1 %v4592_v51 }
 0x106   : >> { %2434 = vmatpush1.bf16.msra.mxu0 %v4593_v29  ;;  %2626 = vmatpush1.bf16.msra.mxu1 %v4594_v54 }
 0x107   : >> { %2436 = vmatprep.subr.bf16.mxu0 %v4595_v7  ;;  %2628 = vmatprep.subr.bf16.mxu1 %v4596_v32 }
 0x10a   : >> { %2438 = vmatpush1.bf16.msra.mxu0 %v4597_v31  ;;  %2630 = vmatpush1.bf16.msra.mxu1 %v4598_v36  ;;  %v4616_v36 = vld [vmem:[#allocation21_spill] sm:$0xff] }
 0x10b   : >> { %2440 = vmatprep.subr.bf16.mxu0 %v4599_v59  ;;  %2632 = vmatprep.subr.bf16.mxu1 %v4600_v38  ;;  %v4613_v59 = vld [vmem:[#allocation75_spill] sm:$0xff]  ;;  %v4614_v38 = vld [vmem:[#allocation20_spill] sm:$0xff] }
 0x10e   : >> { %2442 = vmatpush1.bf16.msra.mxu0 %v4601_v52  ;;  %2634 = vmatpush1.bf16.msra.mxu1 %v4602_v15  ;;  %v4615_v52 = vand.u32 4294901760, %v4614_v38  ;;  %v4617_v15 = vand.u32 4294901760, %v4616_v36  ;;  %v4624_v36 = vld [vmem:[#allocation60_spill] sm:$0xff] }
 0x10f   : >> { %2444 = vmatprep.subr.bf16.mxu0 %v4603_v23  ;;  %2636 = vmatprep.subr.bf16.mxu1 %v4608_v45  ;;  %v4618_v23 = vld [vmem:[#allocation77_spill] sm:$0xff]  ;;  %v2641_v45 = vpack.c.bf16 %v4622_v14, %v4620_v58 }
 0x110   : >> { %v2449_v31 = vpack.c.bf16 %v4617_v15, %v4615_v52 }
 0x112   : >> { %2446 = vmatpush1.bf16.msra.mxu0 %v4613_v59  ;;  %2638 = vmatpush1.bf16.msra.mxu1 %v4618_v23 }
 0x113   : >> { %2448 = vmatprep.subr.bf16.mxu0 %v2447_v22  ;;  %2640 = vmatprep.subr.bf16.mxu1 %v2639_v25 }
 0x115   : >> { %895 = vmatmul.mubr.f32.vlgmr.msra.gmra.mrb[0].mxu0 %v4623_v11  ;;  %1799 = vmatmul.mubr.f32.vlgmr.msra.gmra.mrb[0].mxu1 %v4623_v11 }
 0x116   : >> { %2450 = vmatpush1.bf16.msra.mxu0 %v2449_v31  ;;  %2642 = vmatpush1.bf16.msra.mxu1 %v2641_v45 }
 0x117   : >> { %2452 = vmatprep.subr.bf16.mxu0 %v3770_v49  ;;  %2644 = vmatprep.subr.bf16.mxu1 %v3776_v34  ;;  %v4626_v34 = vld [vmem:[#allocation63_spill] sm:$0xff]  ;;  %v4627_v49 = vld [vmem:[#allocation65_spill] sm:$0xff] }
 0x118   : >> { %900 = vmatprep.mubr.f32.mxu0 %v4466_v21  ;;  %1804 = vmatprep.mubr.f32.mxu1 %v4466_v21 }
 0x119   : >> { %904 = vmatmul.mubr.f32.gmra.mrb[2].mxu0 %v4624_v36  ;;  %1808 = vmatmul.mubr.f32.gmra.mrb[2].mxu1 %v4624_v36  ;;  %v2147_v36 = vld [vmem:[#allocation3 + $0x8] sm:$0xff] }
 0x11a   : >> { %2454 = vmatpush1.bf16.msra.mxu0 %v3782_v28  ;;  %2646 = vmatpush1.bf16.msra.mxu1 %v3788_v27  ;;  %v4625_v28 = vld [vmem:[#allocation62_spill] sm:$0xff]  ;;  %v4628_v27 = vld [vmem:[#allocation36_spill] sm:$0xff] }
 0x11b   : >> { %2456 = vmatprep.subr.bf16.mxu0 %v3794_v18  ;;  %2648 = vmatprep.subr.bf16.mxu1 %v3800_v63  ;;  %v4629_v18 = vld [vmem:[#allocation38_spill] sm:$0xff]  ;;  %v4630_v63 = vld [vmem:[#allocation80_spill] sm:$0xff] }
 0x11c   : >> { %1070 = vmatprep.mubr.f32.mxu0 %v4466_v21  ;;  %1974 = vmatprep.mubr.f32.mxu1 %v4466_v21 }
 0x11e   : >> { %2458 = vmatpush1.bf16.msra.mxu0 %v3807_v26  ;;  %2650 = vmatpush1.bf16.msra.mxu1 %v3813_v4  ;;  %v4632_v26 = vld [vmem:[#allocation58_spill] sm:$0xff]  ;;  %v4633_v4 = vld [vmem:[#allocation61_spill] sm:$0xff] }
 0x11f   : >> { %2460 = vmatprep.subr.bf16.mxu0 %v3819_v35  ;;  %2652 = vmatprep.subr.bf16.mxu1 %v3826_v44  ;;  %v4634_v35 = vld [vmem:[#allocation64_spill] sm:$0xff] }
 0x120   : >> { %v4635_v44 = vld [vmem:[#allocation68_spill] sm:$0xff] }
 0x122   : >> { %2462 = vmatpush1.bf16.msra.mxu0 %v3832_v9  ;;  %2654 = vmatpush1.bf16.msra.mxu1 %v3838_v24  ;;  %v4636_v9 = vld [vmem:[#allocation69_spill] sm:$0xff]  ;;  %v4637_v24 = vld [vmem:[#allocation70_spill] sm:$0xff] }
 0x123   : >> { %2464 = vmatprep.subr.bf16.mxu0 %v3844_v43  ;;  %2656 = vmatprep.subr.bf16.mxu1 %v3850_v62  ;;  %v4638_v43 = vld [vmem:[#allocation71_spill] sm:$0xff]  ;;  %v4639_v62 = vld [vmem:[#allocation74_spill] sm:$0xff] }
 0x126   : >> { %2466 = vmatpush1.bf16.msra.mxu0 %v3856_v17  ;;  %2658 = vmatpush1.bf16.msra.mxu1 %v3862_v42  ;;  %v218_v17 = vld [vmem:[%s4104_s7] sm:$0xff]  ;;  %v219_v42 = vld [vmem:[%s4104_s7 + $0x8] sm:$0xff] }
 0x127   : >> { %2468 = vmatprep.subr.bf16.mxu0 %v3868_v13  ;;  %2660 = vmatprep.subr.bf16.mxu1 %v3874_v37 }
 0x12a   : >> { %2470 = vmatpush1.bf16.msra.mxu0 %v3880_v55  ;;  %2662 = vmatpush1.bf16.msra.mxu1 %v4625_v28 }
 0x12b   : >> { %2472 = vmatprep.subr.bf16.mxu0 %v4626_v34  ;;  %2664 = vmatprep.subr.bf16.mxu1 %v4627_v49 }
 0x12e   : >> { %2474 = vmatpush1.bf16.msra.mxu0 %v4628_v27  ;;  %2666 = vmatpush1.bf16.msra.mxu1 %v4629_v18 }
 0x12f   : >> { %2476 = vmatprep.subr.bf16.mxu0 %v3916_v2  ;;  %2668 = vmatprep.subr.bf16.mxu1 %v3922_v60  ;;  %v4631_v60 = vld [vmem:[#allocation45_spill] sm:$0xff] }
 0x130   : >> { %v222_v2 = vld [vmem:[%s4104_s7 + $0x20] sm:$0xff] }
 0x132   : >> { %2478 = vmatpush1.bf16.msra.mxu0 %v3928_v0  ;;  %2670 = vmatpush1.bf16.msra.mxu1 %v3934_v61 }
 0x133   : >> { %2480 = vmatprep.subr.bf16.mxu0 %v4573_v56  ;;  %2672 = vmatprep.subr.bf16.mxu1 %v4574_v3  ;;  %v223_v3 = vld [vmem:[%s4104_s7 + $0x28] sm:$0xff] }
 0x135   : >> { %1072 = vmatmul.mubr.f32.vlgmr.msra.gmra.mrb[0].mxu0 %v4630_v63  ;;  %1976 = vmatmul.mubr.f32.vlgmr.msra.gmra.mrb[0].mxu1 %v4630_v63 }
 0x136   : >> { %2482 = vmatpush1.bf16.msra.mxu0 %v4576_v20  ;;  %2674 = vmatpush1.bf16.msra.mxu1 %v4577_v12 }
 0x137   : >> { %2484 = vmatprep.subr.bf16.mxu0 %v4578_v57  ;;  %2676 = vmatprep.subr.bf16.mxu1 %v4579_v10  ;;  %v221_v57 = vld [vmem:[%s4104_s7 + $0x18] sm:$0xff] }
 0x138   : >> { %1077 = vmatprep.mubr.f32.mxu0 %v4466_v21  ;;  %1981 = vmatprep.mubr.f32.mxu1 %v4466_v21 }
 0x139   : >> { %1079 = vmatmul.mubr.f32.gmra.mrb[2].mxu0 %v4631_v60  ;;  %1983 = vmatmul.mubr.f32.gmra.mrb[2].mxu1 %v4631_v60 }
 0x13a   : >> { %2486 = vmatpush1.bf16.msra.mxu0 %v4581_v48  ;;  %2678 = vmatpush1.bf16.msra.mxu1 %v4582_v39 }
 0x13b   : >> { %2488 = vmatprep.subr.bf16.mxu0 %v4583_v19  ;;  %2680 = vmatprep.subr.bf16.mxu1 %v4584_v47 }
 0x13c   : >> { %1181 = vmatprep.mubr.f32.mxu0 %v4466_v21  ;;  %2085 = vmatprep.mubr.f32.mxu1 %v4466_v21 }
 0x13e   : >> { %2490 = vmatpush1.bf16.msra.mxu0 %v4585_v6  ;;  %2682 = vmatpush1.bf16.msra.mxu1 %v4586_v8 }
 0x13f   : >> { %2492 = vmatprep.subr.bf16.mxu0 %v4587_v53  ;;  %2684 = vmatprep.subr.bf16.mxu1 %v4588_v16  ;;  %v225_v16 = vld [vmem:[%s4104_s7 + $0x38] sm:$0xff] }
 0x142   : >> { %2494 = vmatpush1.bf16.msra.mxu0 %v4589_v33  ;;  %2686 = vmatpush1.bf16.msra.mxu1 %v4590_v50  ;;  %v220_v33 = vld [vmem:[%s4104_s7 + $0x10] sm:$0xff] }
 0x143   : >> { %2496 = vmatprep.subr.bf16.mxu0 %v4591_v46  ;;  %2688 = vmatprep.subr.bf16.mxu1 %v4592_v51 }
 0x146   : >> { %2498 = vmatpush1.bf16.msra.mxu0 %v4593_v29  ;;  %2690 = vmatpush1.bf16.msra.mxu1 %v4594_v54  ;;  %v224_v29 = vld [vmem:[%s4104_s7 + $0x30] sm:$0xff] }
 0x147   : >> { %2500 = vmatprep.subr.bf16.mxu0 %v4595_v7  ;;  %2692 = vmatprep.subr.bf16.mxu1 %v4596_v32 }
 0x14a   : >> { %2502 = vmatpush1.bf16.msra.mxu0 %v4632_v26  ;;  %2694 = vmatpush1.bf16.msra.mxu1 %v4633_v4 }
 0x14b   : >> { %2504 = vmatprep.subr.bf16.mxu0 %v4634_v35  ;;  %2696 = vmatprep.subr.bf16.mxu1 %v4635_v44 }
 0x14e   : >> { %2506 = vmatpush1.bf16.msra.mxu0 %v4636_v9  ;;  %2698 = vmatpush1.bf16.msra.mxu1 %v4637_v24 }
 0x14f   : >> { %2508 = vmatprep.subr.bf16.mxu0 %v4638_v43  ;;  %2700 = vmatprep.subr.bf16.mxu1 %v4639_v62 }
 0x152   : >> { %2510 = vmatpush1.bf16.msra.mxu0 %v4613_v59  ;;  %2702 = vmatpush1.bf16.msra.mxu1 %v4618_v23 }
 0x155   : >> { %1183 = vmatmul.mubr.f32.vlgmr.msra.gmra.mrb[0].mxu0 %v4630_v63  ;;  %2087 = vmatmul.mubr.f32.vlgmr.msra.gmra.mrb[0].mxu1 %v4630_v63 }
 0x156   : >> { %1188 = vmatprep.mubr.f32.mxu0 %v4466_v21  ;;  %2092 = vmatprep.mubr.f32.mxu1 %v4466_v21 }
 0x159   : >> { %1190 = vmatmul.mubr.f32.gmra.mrb[2].mxu0 %v4631_v60  ;;  %2094 = vmatmul.mubr.f32.gmra.mrb[2].mxu1 %v4631_v60 }
 0x228   : >> { %v1184_v13 = vpop.f32.mrb[0].mxu0  ;;  %v2088_v55 = vpop.f32.mrb[0].mxu1 }
 0x229   : >> { %v2100_v37 = vadd.f32 %v1184_v13, %v218_v17  ;;  %v1186_v61 = vpop.f32.mrb[1].mxu0  ;;  %v2090_v21 = vpop.f32.mrb[1].mxu1  ;;  %v2102_v51 = vadd.f32 %v2088_v55, %v220_v33 }
 0x22a   : >> { %v2101_v0 = vadd.f32 %v1186_v61, %v219_v42  ;;  %v2103_v8 = vadd.f32 %v2090_v21, %v221_v57 }
 0x22b   : >> { %v2301_v56 = vmul.f32 -1.442695, %v2100_v37 }
 0x22c   : >> { %v2303_v20 = vmul.f32 -1.442695, %v2101_v0  ;;  %v1191_v12 = vpop.f32.mrb[2].mxu0  ;;  %v2095_v48 = vpop.f32.mrb[2].mxu1  ;;  %v2305_v50 = vmul.f32 -1.442695, %v2103_v8 }
 0x22d   : >> { %2833 = vpow2.f32 %v2301_v56  ;;  %v2104_v10 = vadd.f32 %v1191_v12, %v222_v2  ;;  %v1193_v39 = vpop.f32.mrb[3].mxu0  ;;  %v2097_v47 = vpop.f32.mrb[3].mxu1  ;;  %v2106_v38 = vadd.f32 %v2095_v48, %v224_v29 }
 0x22e   : >> { %2835 = vpow2.f32 %v2303_v20  ;;  %v2105_v19 = vadd.f32 %v1193_v39, %v223_v3  ;;  %v2107_v46 = vadd.f32 %v2097_v47, %v225_v16 }
 0x22f   : >> { %v2302_v6 = vmul.f32 -1.442695, %v2104_v10 }
 0x230   : >> { %v2304_v53 = vmul.f32 -1.442695, %v2105_v19  ;;  %v2306_v31 = vmul.f32 -1.442695, %v2107_v46 }
 0x231   : >> { %2837 = vpow2.f32 %v2302_v6 }
 0x232   : >> { %2839 = vpow2.f32 %v2304_v53 }
 0x233   : >> { %2841 = vpow2.f32 %v2305_v50 }
 0x234   : >> { %2843 = vtanh.f32 %v2102_v51 }
 0x237   : >> { %v2834_v54 = vpop.eup %2833 }
 0x238   : >> { %v2836_v7 = vpop.eup %2835  ;;  %v2114_v32 = vadd.f32 1.0, %v2834_v54 }
 0x239   : >> { %v2126_v59 = vadd.f32 1.0, %v2836_v7 }
 0x23a   : >> { %2845 = vrcp.f32 %v2114_v32 }
 0x23b   : >> { %v2838_v52 = vpop.eup %2837  ;;  %2847 = vrcp.f32 %v2126_v59 }
 0x23c   : >> { %v2840_v15 = vpop.eup %2839  ;;  %v2115_v23 = vadd.f32 1.0, %v2838_v52  ;;  %2849 = vpow2.f32 %v2306_v31 }
 0x23d   : >> { %2851 = vtanh.f32 %v2106_v38  ;;  %v2127_v22 = vadd.f32 1.0, %v2840_v15  ;;  %v2842_v45 = vpop.eup %2841 }
 0x23e   : >> { %2853 = vrcp.f32 %v2115_v23  ;;  %v2844_v1 = vpop.eup %2843  ;;  %v2140_v58 = vadd.f32 1.0, %v2842_v45 }
 0x23f   : >> { %2855 = vrcp.f32 %v2127_v22 }
 0x240   : >> { %2857 = vrcp.f32 %v2140_v58 }
 0x244   : >> { %v2846_v30 = vpop.eup %2845 }
 0x245   : >> { %v2848_v25 = vpop.eup %2847  ;;  %v2150_v5 = vmul.f32 %v2846_v30, %v2844_v1 }
 0x246   : >> { %v2850_v41 = vpop.eup %2849  ;;  %v2148_v14 = vmul.f32 %v2848_v25, %v2146_v40 }
 0x247   : >> { %v2852_v11 = vpop.eup %2851  ;;  %v2141_v18 = vadd.f32 1.0, %v2850_v41 }
 0x248   : >> { %v2854_v28 = vpop.eup %2853  ;;  %v2152_v34 = vadd.f32 %v2150_v5, %v2148_v14 }
 0x249   : >> { %v2856_v49 = vpop.eup %2855  ;;  %v2151_v27 = vmul.f32 %v2854_v28, %v2852_v11 }
 0x24a   : >> { %2859 = vtanh.f32 %v2152_v34  ;;  %2158 = vst [vmem:[#allocation3] sm:$0xff] %v2152_v34  ;;  %v2149_v63 = vmul.f32 %v2856_v49, %v2147_v36  ;;  %v2858_v26 = vpop.eup %2857 }
 0x24b   : >> { %2861 = vrcp.f32 %v2141_v18 }
 0x24c   : >> { %v2153_v60 = vadd.f32 %v2151_v27, %v2149_v63 }
 0x24e   : >> { %2863 = vtanh.f32 %v2153_v60  ;;  %2159 = vst [vmem:[#allocation3 + $0x8] sm:$0xff] %v2153_v60 }
 0x254   : >> { %v2860_v4 = vpop.eup %2859 }
 0x255   : >> { %v2156_v35 = vmul.f32 %v2860_v4, %v2858_v26  ;;  %v2862_v44 = vpop.eup %2861  ;;  %213 = sbr.rel (!%p211_p6) target bundleno = 100 (0x64), region = 90 }
 0x257   : >> { %2160 = vst [vmem:[#allocation2] sm:$0xff] %v2156_v35  ;;  %2164 = vst [vmem:[%s2163_s3] sm:$0xff] %v2156_v35 }
 0x258   : >> { %v2864_v9 = vpop.eup %2863 }
 0x259   : >> { %v2157_v24 = vmul.f32 %v2864_v9, %v2862_v44 }
 0x25b   : >> { %2161 = vst [vmem:[#allocation2 + $0x8] sm:$0xff] %v2157_v24  ;;  %2165 = vst [vmem:[%s2163_s3 + $0x8] sm:$0xff] %v2157_v24 }
 0x25c   : > { %2936 = shalt.err (!%p2933_p1)
}
 0x25d   : > { %s2937_s23 = scalar_lea.hbm %s4124_s4, 1536  ;;  %s2941_s19 = scalar_lea.hbm %s4177_s2, 3072 }
 0x25e   : > { %p2938_p2 = scmp.ne.s32.totalorder %s4124_s4, %s2937_s23  ;;  %p2942_p11 = scmp.lt.u32.totalorder %s4124_s4, %s4177_s2 }
 0x25f   : > { %p2943_p4 = scmp.lt.u32.totalorder %s2941_s19, %s2937_s23  ;;  %p2945_p8 = scmp.lt.u32.totalorder %s2937_s23, %s4124_s4 }
 0x260   : > { %p2939_p3 = pnand %p2938_p2, %p3138_p10 }
 0x261   : > { %p2944_p6 = por %p2943_p4, %p2942_p11 }
 0x262   : > { %p2940_p7 = pneg %p2939_p3 }
 0x263   : > { %p2946_p12 = por %p2945_p8, %p2944_p6 }
 0x265   : > { %p2947_p13 = pnand %p2946_p12, %p2940_p7 }
 0x267   : > { %2950 = shalt.err (!%p2947_p13)
}
 0x268   : > { %s3026_s30 = smov 128   ;;  %s3027_s3 = smov 8  }
 0x269   : > { %2752 = dma.vmem_to_hbm [thread:$0]  (%p3138_p10), %s4126_s8, 1536, %s4124_s4, %s2167_s18, %s3026_s30, %s3026_s30, %s3027_s3  }
 0x26a PF: > { %s2198_s5 = sand.u32 1, %s2993_s9   ;;  %p4640_p0 = scmp.ne.s32.totalorder %s4387_s20, 0 }
 0x26b   : > { %p4641_p5 = scmp.ge.s32.totalorder %s3013_s14, 2  ;;  %s2199_s29 = scalar_lea.sflag [#allocation6], %s2198_s5 }
 0x26d   : > { %p2763_p9 = pnand %p4641_p5, %p4640_p0 }
 0x26f   : > { %2988 = dma.done.wait (!%p2763_p9), %s2199_s29, 1536  }
 0x270   : > { %2990 = vsyncadd (!%p2763_p9), %s2199_s29, 4294965760  ;;  %s19_s14 = sadd.s32 1, %s3013_s14   ;;  %s4642_s9 = smov %s2997_s10 }
 0x271   : > { %p16_p1 = scmp.ge.s32.totalorder %s19_s14, 4   ;;  %s4643_s10 = smov %s3001_s11 }
 0x272   : > { %s4644_s11 = smov %s3147_s28  ;;  %s4645_s12 = smov %s3009_s13 }
 0x273   : > { %s4646_s13 = smov %s4648_s25  ;;  %18 = sbr.rel (!%p16_p1) target bundleno = 7 (0x7), region = 101 }
 0x27a   :  { %2204 = vsyncpa [#allocation5], 1 }
 0x27b   :  { %2206 = vsyncpa [#allocation5 + $0x1], 1 }
 0x27c   :  { %2207 = vsyncpa [#allocation8], 1 }
 0x27d   :  { %2208 = vsyncpa [#allocation6], 1 }
 0x27e   :  { %2210 = vsyncpa [#allocation6 + $0x1], 1 }

</bundles_post_ra>
